<compile_context>
chip_gen: v6e
topology: v6e:2x2x1
jax: 0.10.0
libtpu: 0.0.40
codegen_flags: <defaults>
</compile_context>

<pallas_src>
import functools
import math

import jax
import jax.numpy as jnp
from jax import lax
from jax.experimental import pallas as pl
from jax.experimental.pallas import tpu as pltpu


def _layernorm(x, gamma, beta, eps=1e-5):
    # One-pass variance (E[x^2] - mean^2): one fewer cross-lane reduction than
    # mean((x - mean)^2).
    mean = jnp.mean(x, axis=-1, keepdims=True)
    mean_sq = jnp.mean(x * x, axis=-1, keepdims=True)
    var = mean_sq - mean * mean
    return (x - mean) * lax.rsqrt(var + eps) * gamma + beta


def _encoder_layer_kernel(nhead,
                          x_ref,                    # (S, D) f32 (batch dim squeezed)
                          wq_ref, bq_ref,           # (D, D) bf16, (1, D) f32 (scale folded)
                          wk_ref, bk_ref,           # (D, D) bf16, (1, D) f32
                          wv_ref, bv_ref,           # (D, D) bf16, (1, D) f32
                          wout_ref, bout_ref,       # (D, D) bf16, (1, D) f32
                          w1_ref, b1_ref,           # (D, F) bf16, (1, F) f32
                          w2_ref, b2_ref,           # (F, D) bf16, (1, D) f32
                          g1_ref, be1_ref,          # (1, D) f32
                          g2_ref, be2_ref,          # (1, D) f32
                          o_ref,                    # (tq, D)
                          k_sc, v_sc,               # (S, D) bf16 VMEM scratch (per-batch K/V)
                          ctx_sc):                  # (tq, D) bf16 VMEM scratch (head concat)
    qi = pl.program_id(1)
    S, D = x_ref.shape
    tq = o_ref.shape[0]
    hd = D // nhead

    # --- K/V projection once per batch element (query-tile 0), kept VMEM-resident ---
    @pl.when(qi == 0)
    def _():
        x_bf = x_ref[...].astype(jnp.bfloat16)                                  # (S, D)
        k = jnp.dot(x_bf, wk_ref[...], preferred_element_type=jnp.float32) + bk_ref[...]
        k_sc[...] = k.astype(jnp.bfloat16)
        v = jnp.dot(x_bf, wv_ref[...], preferred_element_type=jnp.float32) + bv_ref[...]
        v_sc[...] = v.astype(jnp.bfloat16)

    # --- query tile (residual path stays f32) ---
    q_start = pl.multiple_of(qi * tq, tq)
    x_tile = x_ref[pl.ds(q_start, tq), :]                                       # (tq, D) f32
    # 1/sqrt(hd) is already folded into wq / bq by the wrapper.
    q = (jnp.dot(x_tile.astype(jnp.bfloat16), wq_ref[...],
                 preferred_element_type=jnp.float32)
         + bq_ref[...]).astype(jnp.bfloat16)                                    # (tq, D)

    # --- per-head attention; ctx written to scratch, projection fused afterwards ---
    for h in range(nhead):                                   # nhead is static -> unrolled
        lo, hi = h * hd, (h + 1) * hd                        # static lane slices
        s = lax.dot_general(q[:, lo:hi], k_sc[:, lo:hi],
                            (((1,), (1,)), ((), ())),
                            preferred_element_type=jnp.float32)                 # (tq, S)
        s = s - jnp.max(s, axis=-1, keepdims=True)
        p = jnp.exp(s)
        p = p * pl.reciprocal(jnp.sum(p, axis=-1, keepdims=True), approx=True)
        ctx = jnp.dot(p.astype(jnp.bfloat16), v_sc[:, lo:hi],
                      preferred_element_type=jnp.float32)                       # (tq, hd)
        ctx_sc[:, lo:hi] = ctx.astype(jnp.bfloat16)

    # ONE K=D output projection over the concatenated heads (full MXU utilization).
    attn = (jnp.dot(ctx_sc[...], wout_ref[...],
                    preferred_element_type=jnp.float32) + bout_ref[...])        # (tq, D)

    # --- residual + norm1 (dropout1 = identity) ---
    src1 = _layernorm(x_tile + attn, g1_ref[...], be1_ref[...])

    # --- feed-forward (dropout = identity), bf16 operands / f32 accumulation ---
    h1 = jnp.dot(src1.astype(jnp.bfloat16), w1_ref[...],
                 preferred_element_type=jnp.float32) + b1_ref[...]              # (tq, F)
    h1 = jnp.maximum(h1, 0.0)                                                   # ReLU
    h2 = jnp.dot(h1.astype(jnp.bfloat16), w2_ref[...],
                 preferred_element_type=jnp.float32) + b2_ref[...]              # (tq, D)

    # --- residual + norm2 (dropout2 = identity) ---
    o_ref[...] = _layernorm(src1 + h2, g2_ref[...], be2_ref[...]).astype(o_ref.dtype)


def _pick_query_tile(S):
    for cand in (256, 128, 64, 32, 16, 8):
        if S % cand == 0:
            return cand
    return S            # awkward sequence lengths: single tile == full sequence


def transformer_encoder_layer(src, params, nhead):
    """src: (seq_len, batch, d_model) — PyTorch convention.  Returns same shape."""
    S, B, D = src.shape
    F = params["w1"].shape[0]
    assert D % nhead == 0, "d_model must be divisible by nhead"
    hd = D // nhead
    scale = 1.0 / math.sqrt(hd)

    x = jnp.transpose(src, (1, 0, 2))                 # (B, S, D)
    tq = _pick_query_tile(S)
    nq = S // tq

    w_in, b_in = params["w_in"], params["b_in"]       # (3D, D), (1, 3D)
    # Pre-transpose / pre-cast weights ONCE in the wrapper (cheap XLA ops); fold the
    # 1/sqrt(hd) softmax scale into the q projection weight and bias.
    weight_args = (
        (w_in[:D].T * scale).astype(jnp.bfloat16),        # wq (D, D), scaled
        (b_in[:, :D] * scale).astype(jnp.float32),        # bq (1, D), scaled
        w_in[D:2 * D].T.astype(jnp.bfloat16),             # wk (D, D)
        b_in[:, D:2 * D].astype(jnp.float32),             # bk (1, D)
        w_in[2 * D:].T.astype(jnp.bfloat16),              # wv (D, D)
        b_in[:, 2 * D:].astype(jnp.float32),              # bv (1, D)
        params["w_out"].T.astype(jnp.bfloat16),           # (D, D)
        params["b_out"].astype(jnp.float32),              # (1, D)
        params["w1"].T.astype(jnp.bfloat16),              # (D, F)
        params["b1"].astype(jnp.float32),                 # (1, F)
        params["w2"].T.astype(jnp.bfloat16),              # (F, D)
        params["b2"].astype(jnp.float32),                 # (1, D)
        params["g1"].astype(jnp.float32),
        params["be1"].astype(jnp.float32),
        params["g2"].astype(jnp.float32),
        params["be2"].astype(jnp.float32),
    )

    # Advisory cost estimate (weights are DMA'd once: their index_map is grid-invariant).
    flops = B * (6 * S * D * D          # q/k/v projections
                 + 4 * S * S * D        # QK^T + PV over all heads
                 + 2 * S * D * D        # output projection
                 + 4 * S * D * F)       # FFN (two matmuls)
    transcendentals = B * (nhead * S * S + nhead * S + 2 * S)
    weight_bytes = sum(int(a.size) * a.dtype.itemsize for a in weight_args)
    bytes_accessed = 2 * B * S * D * 4 + weight_bytes
    cost = pl.CostEstimate(flops=flops, transcendentals=transcendentals,
                           bytes_accessed=bytes_accessed)

    # Explicit VMEM budget from the actual tile footprint (with headroom), capped at
    # 64 MiB so it is valid on v7x while exceeding v5e/v6e's small scoped defaults.
    scratch_bytes = (2 * S * D + tq * D) * 2                  # bf16 K/V/ctx scratch
    io_bytes = 2 * (S * D + tq * D) * 4                       # double-buffered x / out tiles
    temp_bytes = 4 * (S * D + tq * S + 2 * tq * F + 6 * tq * D)   # rough f32 temporaries
    vmem_limit = int(min(max(1.5 * (weight_bytes + scratch_bytes + io_bytes + temp_bytes),
                             32 * 1024 * 1024),
                         64 * 1024 * 1024))

    def build(single_buffer_weights):
        def const_spec(shape):
            if single_buffer_weights:
                # Grid-invariant weights: one buffer is enough (double-buffering would
                # only double their VMEM residency, which matters on v7x / v5e).
                return pl.BlockSpec(shape, lambda b, qi: (0, 0),
                                    pipeline_mode=pl.Buffered(1))
            return pl.BlockSpec(shape, lambda b, qi: (0, 0))

        in_specs = [pl.BlockSpec((None, S, D), lambda b, qi: (b, 0, 0))]
        in_specs += [const_spec(a.shape) for a in weight_args]

        return pl.pallas_call(
            functools.partial(_encoder_layer_kernel, nhead),
            out_shape=jax.ShapeDtypeStruct((B, S, D), src.dtype),
            grid_spec=pltpu.PrefetchScalarGridSpec(
                num_scalar_prefetch=0,
                grid=(B, nq),
                in_specs=in_specs,
                out_specs=pl.BlockSpec((None, tq, D), lambda b, qi: (b, qi, 0)),
                scratch_shapes=[pltpu.VMEM((S, D), jnp.bfloat16),   # K scratch
                                pltpu.VMEM((S, D), jnp.bfloat16),   # V scratch
                                pltpu.VMEM((tq, D), jnp.bfloat16)], # head-concat ctx
            ),
            compiler_params=pltpu.CompilerParams(
                dimension_semantics=("parallel", "arbitrary"),
                vmem_limit_bytes=vmem_limit),
            cost_estimate=cost,
        )

    try:
        out = build(single_buffer_weights=True)(x, *weight_args)
    except Exception:
        # pipeline_mode=pl.Buffered(1) unsupported on this jax build: fall back to the
        # default (double-buffered) weight specs — identical math, just more VMEM.
        out = build(single_buffer_weights=False)(x, *weight_args)

    return jnp.transpose(out, (1, 0, 2))              # back to (S, B, D)


def _reference(src, params, nhead):
    """Pure-JAX f32 reference for correctness checking."""
    S, B, D = src.shape
    x = jnp.transpose(src, (1, 0, 2)).astype(jnp.float32)
    hd = D // nhead
    w_in, b_in = params["w_in"], params["b_in"][0]
    q = x @ w_in[:D].T + b_in[:D]
    k = x @ w_in[D:2 * D].T + b_in[D:2 * D]
    v = x @ w_in[2 * D:].T + b_in[2 * D:]

    def split(t):  # (B,S,D) -> (B,nhead,S,hd)
        return jnp.transpose(t.reshape(B, S, nhead, hd), (0, 2, 1, 3))

    qh, kh, vh = split(q), split(k), split(v)
    s = jnp.einsum("bhqd,bhkd->bhqk", qh, kh) / math.sqrt(hd)
    p = jax.nn.softmax(s, axis=-1)
    o = jnp.einsum("bhqk,bhkd->bhqd", p, vh)
    o = jnp.transpose(o, (0, 2, 1, 3)).reshape(B, S, D)
    o = o @ params["w_out"].T + params["b_out"][0]

    def ln(t, g, b):
        m = jnp.mean(t, -1, keepdims=True)
        va = jnp.mean((t - m) ** 2, -1, keepdims=True)
        return (t - m) / jnp.sqrt(va + 1e-5) * g[0] + b[0]

    src1 = ln(x + o, params["g1"], params["be1"])
    h = jnp.maximum(src1 @ params["w1"].T + params["b1"][0], 0.0)
    h = h @ params["w2"].T + params["b2"][0]
    out = ln(src1 + h, params["g2"], params["be2"])
    return jnp.transpose(out, (1, 0, 2))


def make_params(key, d_model, nhead, dim_feedforward):
    ks = jax.random.split(key, 8)
    s = 0.05
    return {
        "w_in":  jax.random.normal(ks[0], (3 * d_model, d_model), jnp.float32) * s,
        "b_in":  jax.random.normal(ks[1], (1, 3 * d_model), jnp.float32) * s,
        "w_out": jax.random.normal(ks[2], (d_model, d_model), jnp.float32) * s,
        "b_out": jax.random.normal(ks[3], (1, d_model), jnp.float32) * s,
        "w1":    jax.random.normal(ks[4], (dim_feedforward, d_model), jnp.float32) * s,
        "b1":    jax.random.normal(ks[5], (1, dim_feedforward), jnp.float32) * s,
        "w2":    jax.random.normal(ks[6], (d_model, dim_feedforward), jnp.float32) * s,
        "b2":    jax.random.normal(ks[7], (1, d_model), jnp.float32) * s,
        "g1":    jnp.ones((1, d_model), jnp.float32),
        "be1":   jnp.zeros((1, d_model), jnp.float32),
        "g2":    jnp.ones((1, d_model), jnp.float32),
        "be2":   jnp.zeros((1, d_model), jnp.float32),
    }


if __name__ == "__main__":
    seq_len, batch, d_model = 8, 2, 32
    nhead, dim_feedforward = 4, 64

    key = jax.random.PRNGKey(0)
    k_x, k_p = jax.random.split(key)
    src = jax.random.normal(k_x, (seq_len, batch, d_model), jnp.float32)
    params = make_params(k_p, d_model, nhead, dim_feedforward)

    out = transformer_encoder_layer(src, params, nhead)
    out = jax.block_until_ready(out)

    ref = _reference(src, params, nhead)
    assert out.shape == (seq_len, batch, d_model)
    # bf16 MXU operands with f32 accumulation (+ approx softmax reciprocal) ->
    # loosened tolerance vs the f32 reference.
    assert jnp.allclose(out, ref, atol=3e-2, rtol=3e-2), "mismatch vs JAX reference"

    print("KERNEL_OK")
</pallas_src>

<mosaic_0001>
module attributes {stable_mosaic.version = 11 : i64} {
  func.func @_encoder_layer_kernel(%arg0: i32, %arg1: i32, %arg2: memref<1x8x32xf32, #tpu.memory_space<vmem>>, %arg3: memref<32x32xbf16, #tpu.memory_space<vmem>>, %arg4: memref<1x32xf32, #tpu.memory_space<vmem>>, %arg5: memref<32x32xbf16, #tpu.memory_space<vmem>>, %arg6: memref<1x32xf32, #tpu.memory_space<vmem>>, %arg7: memref<32x32xbf16, #tpu.memory_space<vmem>>, %arg8: memref<1x32xf32, #tpu.memory_space<vmem>>, %arg9: memref<32x32xbf16, #tpu.memory_space<vmem>>, %arg10: memref<1x32xf32, #tpu.memory_space<vmem>>, %arg11: memref<32x64xbf16, #tpu.memory_space<vmem>>, %arg12: memref<1x64xf32, #tpu.memory_space<vmem>>, %arg13: memref<64x32xbf16, #tpu.memory_space<vmem>>, %arg14: memref<1x32xf32, #tpu.memory_space<vmem>>, %arg15: memref<1x32xf32, #tpu.memory_space<vmem>>, %arg16: memref<1x32xf32, #tpu.memory_space<vmem>>, %arg17: memref<1x32xf32, #tpu.memory_space<vmem>>, %arg18: memref<1x32xf32, #tpu.memory_space<vmem>>, %arg19: memref<1x8x32xf32, #tpu.memory_space<vmem>>, %arg20: memref<8x32xbf16, #tpu.memory_space<vmem>>, %arg21: memref<8x32xbf16, #tpu.memory_space<vmem>>, %arg22: memref<8x32xbf16, #tpu.memory_space<vmem>>) attributes {dimension_semantics = [#tpu.dimension_semantics<parallel>, #tpu.dimension_semantics<arbitrary>], iteration_bounds = array<i64: 2, 1>, scalar_prefetch = 0 : i64, scratch_operands = 3 : i64, tpu.core_type = #tpu.core_type<tc>, window_params = [{transform_indices = @transform_0, window_bounds = array<i64: 1, 8, 32>}, {pipeline_mode = #tpu.pipeline_mode<synchronous>, transform_indices = @transform_1, window_bounds = array<i64: 32, 32>}, {pipeline_mode = #tpu.pipeline_mode<synchronous>, transform_indices = @transform_2, window_bounds = array<i64: 1, 32>}, {pipeline_mode = #tpu.pipeline_mode<synchronous>, transform_indices = @transform_3, window_bounds = array<i64: 32, 32>}, {pipeline_mode = #tpu.pipeline_mode<synchronous>, transform_indices = @transform_4, window_bounds = array<i64: 1, 32>}, {pipeline_mode = #tpu.pipeline_mode<synchronous>, transform_indices = @transform_5, window_bounds = array<i64: 32, 32>}, {pipeline_mode = #tpu.pipeline_mode<synchronous>, transform_indices = @transform_6, window_bounds = array<i64: 1, 32>}, {pipeline_mode = #tpu.pipeline_mode<synchronous>, transform_indices = @transform_7, window_bounds = array<i64: 32, 32>}, {pipeline_mode = #tpu.pipeline_mode<synchronous>, transform_indices = @transform_8, window_bounds = array<i64: 1, 32>}, {pipeline_mode = #tpu.pipeline_mode<synchronous>, transform_indices = @transform_9, window_bounds = array<i64: 32, 64>}, {pipeline_mode = #tpu.pipeline_mode<synchronous>, transform_indices = @transform_10, window_bounds = array<i64: 1, 64>}, {pipeline_mode = #tpu.pipeline_mode<synchronous>, transform_indices = @transform_11, window_bounds = array<i64: 64, 32>}, {pipeline_mode = #tpu.pipeline_mode<synchronous>, transform_indices = @transform_12, window_bounds = array<i64: 1, 32>}, {pipeline_mode = #tpu.pipeline_mode<synchronous>, transform_indices = @transform_13, window_bounds = array<i64: 1, 32>}, {pipeline_mode = #tpu.pipeline_mode<synchronous>, transform_indices = @transform_14, window_bounds = array<i64: 1, 32>}, {pipeline_mode = #tpu.pipeline_mode<synchronous>, transform_indices = @transform_15, window_bounds = array<i64: 1, 32>}, {pipeline_mode = #tpu.pipeline_mode<synchronous>, transform_indices = @transform_16, window_bounds = array<i64: 1, 32>}, {transform_indices = @transform_17, window_bounds = array<i64: 1, 8, 32>}]} {
    %c0_i32 = arith.constant 0 : i32
    %0 = arith.cmpi eq, %arg1, %c0_i32 : i32
    %1 = arith.extui %0 : i1 to i32
    %c0_i32_0 = arith.constant 0 : i32
    %2 = arith.cmpi ne, %1, %c0_i32_0 : i32
    scf.if %2 {
      %c0_82 = arith.constant 0 : index
      %c0_83 = arith.constant 0 : index
      %c0_84 = arith.constant 0 : index
      %160 = vector.load %arg2[%c0_82, %c0_83, %c0_84] : memref<1x8x32xf32, #tpu.memory_space<vmem>>, vector<1x8x32xf32>
      %161 = vector.shape_cast %160 : vector<1x8x32xf32> to vector<8x32xf32>
      %162 = arith.truncf %161 : vector<8x32xf32> to vector<8x32xbf16>
      %c0_85 = arith.constant 0 : index
      %c0_86 = arith.constant 0 : index
      %163 = vector.load %arg5[%c0_85, %c0_86] : memref<32x32xbf16, #tpu.memory_space<vmem>>, vector<32x32xbf16>
      %cst_87 = arith.constant dense<0.000000e+00> : vector<8x32xf32>
      %164 = tpu.matmul %162, %163, %cst_87 {dimension_numbers = #tpu.dot_dimension_numbers<[1], [0], [0], [1], [0, 0, 1, 1], [], []>} : vector<8x32xbf16>, vector<32x32xbf16>, vector<8x32xf32> -> vector<8x32xf32>
      %c0_88 = arith.constant 0 : index
      %c0_89 = arith.constant 0 : index
      %165 = vector.load %arg6[%c0_88, %c0_89] : memref<1x32xf32, #tpu.memory_space<vmem>>, vector<1x32xf32>
      %166 = vector.broadcast %165 : vector<1x32xf32> to vector<8x32xf32>
      %167 = arith.addf %164, %166 : vector<8x32xf32>
      %168 = arith.truncf %167 : vector<8x32xf32> to vector<8x32xbf16>
      %c0_90 = arith.constant 0 : index
      %c0_91 = arith.constant 0 : index
      %169 = vector.load %arg20[%c0_90, %c0_91] : memref<8x32xbf16, #tpu.memory_space<vmem>>, vector<8x32xbf16>
      tpu.vector_store %arg20[%c0_90, %c0_91], %168 {strides = array<i32>} : memref<8x32xbf16, #tpu.memory_space<vmem>>, vector<8x32xbf16>,
      %c0_92 = arith.constant 0 : index
      %c0_93 = arith.constant 0 : index
      %170 = vector.load %arg7[%c0_92, %c0_93] : memref<32x32xbf16, #tpu.memory_space<vmem>>, vector<32x32xbf16>
      %cst_94 = arith.constant dense<0.000000e+00> : vector<8x32xf32>
      %171 = tpu.matmul %162, %170, %cst_94 {dimension_numbers = #tpu.dot_dimension_numbers<[1], [0], [0], [1], [0, 0, 1, 1], [], []>} : vector<8x32xbf16>, vector<32x32xbf16>, vector<8x32xf32> -> vector<8x32xf32>
      %c0_95 = arith.constant 0 : index
      %c0_96 = arith.constant 0 : index
      %172 = vector.load %arg8[%c0_95, %c0_96] : memref<1x32xf32, #tpu.memory_space<vmem>>, vector<1x32xf32>
      %173 = vector.broadcast %172 : vector<1x32xf32> to vector<8x32xf32>
      %174 = arith.addf %171, %173 : vector<8x32xf32>
      %175 = arith.truncf %174 : vector<8x32xf32> to vector<8x32xbf16>
      %c0_97 = arith.constant 0 : index
      %c0_98 = arith.constant 0 : index
      %176 = vector.load %arg21[%c0_97, %c0_98] : memref<8x32xbf16, #tpu.memory_space<vmem>>, vector<8x32xbf16>
      tpu.vector_store %arg21[%c0_97, %c0_98], %175 {strides = array<i32>} : memref<8x32xbf16, #tpu.memory_space<vmem>>, vector<8x32xbf16>,
    } else {
    }
    %c8_i32 = arith.constant 8 : i32
    %3 = arith.muli %arg1, %c8_i32 : i32
    %4 = tpu.assume_multiple %3, 8 : i32
    %c0 = arith.constant 0 : index
    %5 = arith.index_cast %4 : i32 to index
    %c0_1 = arith.constant 0 : index
    %6 = vector.load %arg2[%c0, %5, %c0_1] : memref<1x8x32xf32, #tpu.memory_space<vmem>>, vector<1x8x32xf32>
    %7 = vector.shape_cast %6 : vector<1x8x32xf32> to vector<8x32xf32>
    %8 = arith.truncf %7 : vector<8x32xf32> to vector<8x32xbf16>
    %c0_2 = arith.constant 0 : index
    %c0_3 = arith.constant 0 : index
    %9 = vector.load %arg3[%c0_2, %c0_3] : memref<32x32xbf16, #tpu.memory_space<vmem>>, vector<32x32xbf16>
    %cst = arith.constant dense<0.000000e+00> : vector<8x32xf32>
    %10 = tpu.matmul %8, %9, %cst {dimension_numbers = #tpu.dot_dimension_numbers<[1], [0], [0], [1], [0, 0, 1, 1], [], []>} : vector<8x32xbf16>, vector<32x32xbf16>, vector<8x32xf32> -> vector<8x32xf32>
    %c0_4 = arith.constant 0 : index
    %c0_5 = arith.constant 0 : index
    %11 = vector.load %arg4[%c0_4, %c0_5] : memref<1x32xf32, #tpu.memory_space<vmem>>, vector<1x32xf32>
    %12 = vector.broadcast %11 : vector<1x32xf32> to vector<8x32xf32>
    %13 = arith.addf %10, %12 : vector<8x32xf32>
    %14 = arith.truncf %13 : vector<8x32xf32> to vector<8x32xbf16>
    %15 = vector.extract_strided_slice %14 {offsets = [0, 0], sizes = [8, 8], strides = [1, 1]} : vector<8x32xbf16> to vector<8x8xbf16>
    %c0_6 = arith.constant 0 : index
    %c0_7 = arith.constant 0 : index
    %16 = vector.load %arg20[%c0_6, %c0_7] : memref<8x32xbf16, #tpu.memory_space<vmem>>, vector<8x8xbf16>
    %cst_8 = arith.constant dense<0.000000e+00> : vector<8x8xf32>
    %17 = tpu.matmul %15, %16, %cst_8 {dimension_numbers = #tpu.dot_dimension_numbers<[1], [1], [0], [0], [0, 0, 1, 0], [], []>} : vector<8x8xbf16>, vector<8x8xbf16>, vector<8x8xf32> -> vector<8x8xf32>
    %cst_9 = arith.constant dense<0xFF800000> : vector<8xf32>
    %18 = vector.multi_reduction <maximumf>, %17, %cst_9 [1] : vector<8x8xf32> to vector<8xf32>
    %19 = vector.shape_cast %18 : vector<8xf32> to vector<8x1xf32>
    %20 = vector.broadcast %19 : vector<8x1xf32> to vector<8x8xf32>
    %21 = arith.subf %17, %20 : vector<8x8xf32>
    %22 = math.exp %21 : vector<8x8xf32>
    %cst_10 = arith.constant dense<0.000000e+00> : vector<8xf32>
    %23 = vector.multi_reduction <add>, %22, %cst_10 [1] : vector<8x8xf32> to vector<8xf32>
    %24 = vector.shape_cast %23 : vector<8xf32> to vector<8x1xf32>
    %25 = tpu.reciprocal %24 {approx = true} : vector<8x1xf32> -> vector<8x1xf32>
    %26 = vector.broadcast %25 : vector<8x1xf32> to vector<8x8xf32>
    %27 = arith.mulf %22, %26 : vector<8x8xf32>
    %28 = arith.truncf %27 : vector<8x8xf32> to vector<8x8xbf16>
    %c0_11 = arith.constant 0 : index
    %c0_12 = arith.constant 0 : index
    %29 = vector.load %arg21[%c0_11, %c0_12] : memref<8x32xbf16, #tpu.memory_space<vmem>>, vector<8x8xbf16>
    %cst_13 = arith.constant dense<0.000000e+00> : vector<8x8xf32>
    %30 = tpu.matmul %28, %29, %cst_13 {dimension_numbers = #tpu.dot_dimension_numbers<[1], [0], [0], [1], [0, 0, 1, 1], [], []>} : vector<8x8xbf16>, vector<8x8xbf16>, vector<8x8xf32> -> vector<8x8xf32>
    %31 = arith.truncf %30 : vector<8x8xf32> to vector<8x8xbf16>
    %c0_14 = arith.constant 0 : index
    %c0_15 = arith.constant 0 : index
    %32 = vector.load %arg22[%c0_14, %c0_15] : memref<8x32xbf16, #tpu.memory_space<vmem>>, vector<8x8xbf16>
    tpu.vector_store %arg22[%c0_14, %c0_15], %31 {strides = array<i32>} : memref<8x32xbf16, #tpu.memory_space<vmem>>, vector<8x8xbf16>,
    %33 = vector.extract_strided_slice %14 {offsets = [0, 8], sizes = [8, 8], strides = [1, 1]} : vector<8x32xbf16> to vector<8x8xbf16>
    %c0_16 = arith.constant 0 : index
    %c8 = arith.constant 8 : index
    %34 = vector.load %arg20[%c0_16, %c8] : memref<8x32xbf16, #tpu.memory_space<vmem>>, vector<8x8xbf16>
    %cst_17 = arith.constant dense<0.000000e+00> : vector<8x8xf32>
    %35 = tpu.matmul %33, %34, %cst_17 {dimension_numbers = #tpu.dot_dimension_numbers<[1], [1], [0], [0], [0, 0, 1, 0], [], []>} : vector<8x8xbf16>, vector<8x8xbf16>, vector<8x8xf32> -> vector<8x8xf32>
    %cst_18 = arith.constant dense<0xFF800000> : vector<8xf32>
    %36 = vector.multi_reduction <maximumf>, %35, %cst_18 [1] : vector<8x8xf32> to vector<8xf32>
    %37 = vector.shape_cast %36 : vector<8xf32> to vector<8x1xf32>
    %38 = vector.broadcast %37 : vector<8x1xf32> to vector<8x8xf32>
    %39 = arith.subf %35, %38 : vector<8x8xf32>
    %40 = math.exp %39 : vector<8x8xf32>
    %cst_19 = arith.constant dense<0.000000e+00> : vector<8xf32>
    %41 = vector.multi_reduction <add>, %40, %cst_19 [1] : vector<8x8xf32> to vector<8xf32>
    %42 = vector.shape_cast %41 : vector<8xf32> to vector<8x1xf32>
    %43 = tpu.reciprocal %42 {approx = true} : vector<8x1xf32> -> vector<8x1xf32>
    %44 = vector.broadcast %43 : vector<8x1xf32> to vector<8x8xf32>
    %45 = arith.mulf %40, %44 : vector<8x8xf32>
    %46 = arith.truncf %45 : vector<8x8xf32> to vector<8x8xbf16>
    %c0_20 = arith.constant 0 : index
    %c8_21 = arith.constant 8 : index
    %47 = vector.load %arg21[%c0_20, %c8_21] : memref<8x32xbf16, #tpu.memory_space<vmem>>, vector<8x8xbf16>
    %cst_22 = arith.constant dense<0.000000e+00> : vector<8x8xf32>
    %48 = tpu.matmul %46, %47, %cst_22 {dimension_numbers = #tpu.dot_dimension_numbers<[1], [0], [0], [1], [0, 0, 1, 1], [], []>} : vector<8x8xbf16>, vector<8x8xbf16>, vector<8x8xf32> -> vector<8x8xf32>
    %49 = arith.truncf %48 : vector<8x8xf32> to vector<8x8xbf16>
    %c0_23 = arith.constant 0 : index
    %c8_24 = arith.constant 8 : index
    %50 = vector.load %arg22[%c0_23, %c8_24] : memref<8x32xbf16, #tpu.memory_space<vmem>>, vector<8x8xbf16>
    tpu.vector_store %arg22[%c0_23, %c8_24], %49 {strides = array<i32>} : memref<8x32xbf16, #tpu.memory_space<vmem>>, vector<8x8xbf16>,
    %51 = vector.extract_strided_slice %14 {offsets = [0, 16], sizes = [8, 8], strides = [1, 1]} : vector<8x32xbf16> to vector<8x8xbf16>
    %c0_25 = arith.constant 0 : index
    %c16 = arith.constant 16 : index
    %52 = vector.load %arg20[%c0_25, %c16] : memref<8x32xbf16, #tpu.memory_space<vmem>>, vector<8x8xbf16>
    %cst_26 = arith.constant dense<0.000000e+00> : vector<8x8xf32>
    %53 = tpu.matmul %51, %52, %cst_26 {dimension_numbers = #tpu.dot_dimension_numbers<[1], [1], [0], [0], [0, 0, 1, 0], [], []>} : vector<8x8xbf16>, vector<8x8xbf16>, vector<8x8xf32> -> vector<8x8xf32>
    %cst_27 = arith.constant dense<0xFF800000> : vector<8xf32>
    %54 = vector.multi_reduction <maximumf>, %53, %cst_27 [1] : vector<8x8xf32> to vector<8xf32>
    %55 = vector.shape_cast %54 : vector<8xf32> to vector<8x1xf32>
    %56 = vector.broadcast %55 : vector<8x1xf32> to vector<8x8xf32>
    %57 = arith.subf %53, %56 : vector<8x8xf32>
    %58 = math.exp %57 : vector<8x8xf32>
    %cst_28 = arith.constant dense<0.000000e+00> : vector<8xf32>
    %59 = vector.multi_reduction <add>, %58, %cst_28 [1] : vector<8x8xf32> to vector<8xf32>
    %60 = vector.shape_cast %59 : vector<8xf32> to vector<8x1xf32>
    %61 = tpu.reciprocal %60 {approx = true} : vector<8x1xf32> -> vector<8x1xf32>
    %62 = vector.broadcast %61 : vector<8x1xf32> to vector<8x8xf32>
    %63 = arith.mulf %58, %62 : vector<8x8xf32>
    %64 = arith.truncf %63 : vector<8x8xf32> to vector<8x8xbf16>
    %c0_29 = arith.constant 0 : index
    %c16_30 = arith.constant 16 : index
    %65 = vector.load %arg21[%c0_29, %c16_30] : memref<8x32xbf16, #tpu.memory_space<vmem>>, vector<8x8xbf16>
    %cst_31 = arith.constant dense<0.000000e+00> : vector<8x8xf32>
    %66 = tpu.matmul %64, %65, %cst_31 {dimension_numbers = #tpu.dot_dimension_numbers<[1], [0], [0], [1], [0, 0, 1, 1], [], []>} : vector<8x8xbf16>, vector<8x8xbf16>, vector<8x8xf32> -> vector<8x8xf32>
    %67 = arith.truncf %66 : vector<8x8xf32> to vector<8x8xbf16>
    %c0_32 = arith.constant 0 : index
    %c16_33 = arith.constant 16 : index
    %68 = vector.load %arg22[%c0_32, %c16_33] : memref<8x32xbf16, #tpu.memory_space<vmem>>, vector<8x8xbf16>
    tpu.vector_store %arg22[%c0_32, %c16_33], %67 {strides = array<i32>} : memref<8x32xbf16, #tpu.memory_space<vmem>>, vector<8x8xbf16>,
    %69 = vector.extract_strided_slice %14 {offsets = [0, 24], sizes = [8, 8], strides = [1, 1]} : vector<8x32xbf16> to vector<8x8xbf16>
    %c0_34 = arith.constant 0 : index
    %c24 = arith.constant 24 : index
    %70 = vector.load %arg20[%c0_34, %c24] : memref<8x32xbf16, #tpu.memory_space<vmem>>, vector<8x8xbf16>
    %cst_35 = arith.constant dense<0.000000e+00> : vector<8x8xf32>
    %71 = tpu.matmul %69, %70, %cst_35 {dimension_numbers = #tpu.dot_dimension_numbers<[1], [1], [0], [0], [0, 0, 1, 0], [], []>} : vector<8x8xbf16>, vector<8x8xbf16>, vector<8x8xf32> -> vector<8x8xf32>
    %cst_36 = arith.constant dense<0xFF800000> : vector<8xf32>
    %72 = vector.multi_reduction <maximumf>, %71, %cst_36 [1] : vector<8x8xf32> to vector<8xf32>
    %73 = vector.shape_cast %72 : vector<8xf32> to vector<8x1xf32>
    %74 = vector.broadcast %73 : vector<8x1xf32> to vector<8x8xf32>
    %75 = arith.subf %71, %74 : vector<8x8xf32>
    %76 = math.exp %75 : vector<8x8xf32>
    %cst_37 = arith.constant dense<0.000000e+00> : vector<8xf32>
    %77 = vector.multi_reduction <add>, %76, %cst_37 [1] : vector<8x8xf32> to vector<8xf32>
    %78 = vector.shape_cast %77 : vector<8xf32> to vector<8x1xf32>
    %79 = tpu.reciprocal %78 {approx = true} : vector<8x1xf32> -> vector<8x1xf32>
    %80 = vector.broadcast %79 : vector<8x1xf32> to vector<8x8xf32>
    %81 = arith.mulf %76, %80 : vector<8x8xf32>
    %82 = arith.truncf %81 : vector<8x8xf32> to vector<8x8xbf16>
    %c0_38 = arith.constant 0 : index
    %c24_39 = arith.constant 24 : index
    %83 = vector.load %arg21[%c0_38, %c24_39] : memref<8x32xbf16, #tpu.memory_space<vmem>>, vector<8x8xbf16>
    %cst_40 = arith.constant dense<0.000000e+00> : vector<8x8xf32>
    %84 = tpu.matmul %82, %83, %cst_40 {dimension_numbers = #tpu.dot_dimension_numbers<[1], [0], [0], [1], [0, 0, 1, 1], [], []>} : vector<8x8xbf16>, vector<8x8xbf16>, vector<8x8xf32> -> vector<8x8xf32>
    %85 = arith.truncf %84 : vector<8x8xf32> to vector<8x8xbf16>
    %c0_41 = arith.constant 0 : index
    %c24_42 = arith.constant 24 : index
    %86 = vector.load %arg22[%c0_41, %c24_42] : memref<8x32xbf16, #tpu.memory_space<vmem>>, vector<8x8xbf16>
    tpu.vector_store %arg22[%c0_41, %c24_42], %85 {strides = array<i32>} : memref<8x32xbf16, #tpu.memory_space<vmem>>, vector<8x8xbf16>,
    %c0_43 = arith.constant 0 : index
    %c0_44 = arith.constant 0 : index
    %87 = vector.load %arg22[%c0_43, %c0_44] : memref<8x32xbf16, #tpu.memory_space<vmem>>, vector<8x32xbf16>
    %c0_45 = arith.constant 0 : index
    %c0_46 = arith.constant 0 : index
    %88 = vector.load %arg9[%c0_45, %c0_46] : memref<32x32xbf16, #tpu.memory_space<vmem>>, vector<32x32xbf16>
    %cst_47 = arith.constant dense<0.000000e+00> : vector<8x32xf32>
    %89 = tpu.matmul %87, %88, %cst_47 {dimension_numbers = #tpu.dot_dimension_numbers<[1], [0], [0], [1], [0, 0, 1, 1], [], []>} : vector<8x32xbf16>, vector<32x32xbf16>, vector<8x32xf32> -> vector<8x32xf32>
    %c0_48 = arith.constant 0 : index
    %c0_49 = arith.constant 0 : index
    %90 = vector.load %arg10[%c0_48, %c0_49] : memref<1x32xf32, #tpu.memory_space<vmem>>, vector<1x32xf32>
    %91 = vector.broadcast %90 : vector<1x32xf32> to vector<8x32xf32>
    %92 = arith.addf %89, %91 : vector<8x32xf32>
    %93 = arith.addf %7, %92 : vector<8x32xf32>
    %c0_50 = arith.constant 0 : index
    %c0_51 = arith.constant 0 : index
    %94 = vector.load %arg15[%c0_50, %c0_51] : memref<1x32xf32, #tpu.memory_space<vmem>>, vector<1x32xf32>
    %c0_52 = arith.constant 0 : index
    %c0_53 = arith.constant 0 : index
    %95 = vector.load %arg16[%c0_52, %c0_53] : memref<1x32xf32, #tpu.memory_space<vmem>>, vector<1x32xf32>
    %cst_54 = arith.constant dense<0.000000e+00> : vector<8xf32>
    %96 = vector.multi_reduction <add>, %93, %cst_54 [1] : vector<8x32xf32> to vector<8xf32>
    %97 = vector.shape_cast %96 : vector<8xf32> to vector<8x1xf32>
    %cst_55 = arith.constant 3.200000e+01 : f32
    %98 = vector.broadcast %cst_55 : f32 to vector<8x1xf32>
    %99 = arith.divf %97, %98 : vector<8x1xf32>
    %100 = arith.mulf %93, %93 : vector<8x32xf32>
    %cst_56 = arith.constant dense<0.000000e+00> : vector<8xf32>
    %101 = vector.multi_reduction <add>, %100, %cst_56 [1] : vector<8x32xf32> to vector<8xf32>
    %102 = vector.shape_cast %101 : vector<8xf32> to vector<8x1xf32>
    %cst_57 = arith.constant 3.200000e+01 : f32
    %103 = vector.broadcast %cst_57 : f32 to vector<8x1xf32>
    %104 = arith.divf %102, %103 : vector<8x1xf32>
    %105 = arith.mulf %99, %99 : vector<8x1xf32>
    %106 = arith.subf %104, %105 : vector<8x1xf32>
    %107 = vector.broadcast %99 : vector<8x1xf32> to vector<8x32xf32>
    %108 = arith.subf %93, %107 : vector<8x32xf32>
    %cst_58 = arith.constant 9.99999974E-6 : f32
    %109 = vector.broadcast %cst_58 : f32 to vector<8x1xf32>
    %110 = arith.addf %106, %109 : vector<8x1xf32>
    %111 = math.rsqrt %110 : vector<8x1xf32>
    %112 = vector.broadcast %111 : vector<8x1xf32> to vector<8x32xf32>
    %113 = arith.mulf %108, %112 : vector<8x32xf32>
    %114 = vector.broadcast %94 : vector<1x32xf32> to vector<8x32xf32>
    %115 = arith.mulf %113, %114 : vector<8x32xf32>
    %116 = vector.broadcast %95 : vector<1x32xf32> to vector<8x32xf32>
    %117 = arith.addf %115, %116 : vector<8x32xf32>
    %118 = arith.truncf %117 : vector<8x32xf32> to vector<8x32xbf16>
    %c0_59 = arith.constant 0 : index
    %c0_60 = arith.constant 0 : index
    %119 = vector.load %arg11[%c0_59, %c0_60] : memref<32x64xbf16, #tpu.memory_space<vmem>>, vector<32x64xbf16>
    %cst_61 = arith.constant dense<0.000000e+00> : vector<8x64xf32>
    %120 = tpu.matmul %118, %119, %cst_61 {dimension_numbers = #tpu.dot_dimension_numbers<[1], [0], [0], [1], [0, 0, 1, 1], [], []>} : vector<8x32xbf16>, vector<32x64xbf16>, vector<8x64xf32> -> vector<8x64xf32>
    %c0_62 = arith.constant 0 : index
    %c0_63 = arith.constant 0 : index
    %121 = vector.load %arg12[%c0_62, %c0_63] : memref<1x64xf32, #tpu.memory_space<vmem>>, vector<1x64xf32>
    %122 = vector.broadcast %121 : vector<1x64xf32> to vector<8x64xf32>
    %123 = arith.addf %120, %122 : vector<8x64xf32>
    %cst_64 = arith.constant 0.000000e+00 : f32
    %124 = vector.broadcast %cst_64 : f32 to vector<8x64xf32>
    %125 = arith.maximumf %123, %124 : vector<8x64xf32>
    %126 = arith.truncf %125 : vector<8x64xf32> to vector<8x64xbf16>
    %c0_65 = arith.constant 0 : index
    %c0_66 = arith.constant 0 : index
    %127 = vector.load %arg13[%c0_65, %c0_66] : memref<64x32xbf16, #tpu.memory_space<vmem>>, vector<64x32xbf16>
    %cst_67 = arith.constant dense<0.000000e+00> : vector<8x32xf32>
    %128 = tpu.matmul %126, %127, %cst_67 {dimension_numbers = #tpu.dot_dimension_numbers<[1], [0], [0], [1], [0, 0, 1, 1], [], []>} : vector<8x64xbf16>, vector<64x32xbf16>, vector<8x32xf32> -> vector<8x32xf32>
    %c0_68 = arith.constant 0 : index
    %c0_69 = arith.constant 0 : index
    %129 = vector.load %arg14[%c0_68, %c0_69] : memref<1x32xf32, #tpu.memory_space<vmem>>, vector<1x32xf32>
    %130 = vector.broadcast %129 : vector<1x32xf32> to vector<8x32xf32>
    %131 = arith.addf %128, %130 : vector<8x32xf32>
    %132 = arith.addf %117, %131 : vector<8x32xf32>
    %c0_70 = arith.constant 0 : index
    %c0_71 = arith.constant 0 : index
    %133 = vector.load %arg17[%c0_70, %c0_71] : memref<1x32xf32, #tpu.memory_space<vmem>>, vector<1x32xf32>
    %c0_72 = arith.constant 0 : index
    %c0_73 = arith.constant 0 : index
    %134 = vector.load %arg18[%c0_72, %c0_73] : memref<1x32xf32, #tpu.memory_space<vmem>>, vector<1x32xf32>
    %cst_74 = arith.constant dense<0.000000e+00> : vector<8xf32>
    %135 = vector.multi_reduction <add>, %132, %cst_74 [1] : vector<8x32xf32> to vector<8xf32>
    %136 = vector.shape_cast %135 : vector<8xf32> to vector<8x1xf32>
    %cst_75 = arith.constant 3.200000e+01 : f32
    %137 = vector.broadcast %cst_75 : f32 to vector<8x1xf32>
    %138 = arith.divf %136, %137 : vector<8x1xf32>
    %139 = arith.mulf %132, %132 : vector<8x32xf32>
    %cst_76 = arith.constant dense<0.000000e+00> : vector<8xf32>
    %140 = vector.multi_reduction <add>, %139, %cst_76 [1] : vector<8x32xf32> to vector<8xf32>
    %141 = vector.shape_cast %140 : vector<8xf32> to vector<8x1xf32>
    %cst_77 = arith.constant 3.200000e+01 : f32
    %142 = vector.broadcast %cst_77 : f32 to vector<8x1xf32>
    %143 = arith.divf %141, %142 : vector<8x1xf32>
    %144 = arith.mulf %138, %138 : vector<8x1xf32>
    %145 = arith.subf %143, %144 : vector<8x1xf32>
    %146 = vector.broadcast %138 : vector<8x1xf32> to vector<8x32xf32>
    %147 = arith.subf %132, %146 : vector<8x32xf32>
    %cst_78 = arith.constant 9.99999974E-6 : f32
    %148 = vector.broadcast %cst_78 : f32 to vector<8x1xf32>
    %149 = arith.addf %145, %148 : vector<8x1xf32>
    %150 = math.rsqrt %149 : vector<8x1xf32>
    %151 = vector.broadcast %150 : vector<8x1xf32> to vector<8x32xf32>
    %152 = arith.mulf %147, %151 : vector<8x32xf32>
    %153 = vector.broadcast %133 : vector<1x32xf32> to vector<8x32xf32>
    %154 = arith.mulf %152, %153 : vector<8x32xf32>
    %155 = vector.broadcast %134 : vector<1x32xf32> to vector<8x32xf32>
    %156 = arith.addf %154, %155 : vector<8x32xf32>
    %c0_79 = arith.constant 0 : index
    %c0_80 = arith.constant 0 : index
    %c0_81 = arith.constant 0 : index
    %157 = vector.load %arg19[%c0_79, %c0_80, %c0_81] : memref<1x8x32xf32, #tpu.memory_space<vmem>>, vector<1x8x32xf32>
    %158 = vector.shape_cast %157 : vector<1x8x32xf32> to vector<8x32xf32>
    %159 = vector.shape_cast %156 : vector<8x32xf32> to vector<1x8x32xf32>
    tpu.vector_store %arg19[%c0_79, %c0_80, %c0_81], %159 {strides = array<i32>} : memref<1x8x32xf32, #tpu.memory_space<vmem>>, vector<1x8x32xf32>,
    return
  }
  func.func @transform_0(%arg0: i32, %arg1: i32) -> (i32, i32, i32) {
    %c0_i32 = arith.constant 0 : i32
    %c0_i32_0 = arith.constant 0 : i32
    %c0_i32_1 = arith.constant 0 : i32
    return %arg0, %c0_i32, %c0_i32_0 : i32, i32, i32
  }
  func.func @transform_1(%arg0: i32, %arg1: i32) -> (i32, i32) {
    %c0_i32 = arith.constant 0 : i32
    %c0_i32_0 = arith.constant 0 : i32
    %c0_i32_1 = arith.constant 0 : i32
    return %c0_i32, %c0_i32_0 : i32, i32
  }
  func.func @transform_2(%arg0: i32, %arg1: i32) -> (i32, i32) {
    %c0_i32 = arith.constant 0 : i32
    %c0_i32_0 = arith.constant 0 : i32
    %c0_i32_1 = arith.constant 0 : i32
    return %c0_i32, %c0_i32_0 : i32, i32
  }
  func.func @transform_3(%arg0: i32, %arg1: i32) -> (i32, i32) {
    %c0_i32 = arith.constant 0 : i32
    %c0_i32_0 = arith.constant 0 : i32
    %c0_i32_1 = arith.constant 0 : i32
    return %c0_i32, %c0_i32_0 : i32, i32
  }
  func.func @transform_4(%arg0: i32, %arg1: i32) -> (i32, i32) {
    %c0_i32 = arith.constant 0 : i32
    %c0_i32_0 = arith.constant 0 : i32
    %c0_i32_1 = arith.constant 0 : i32
    return %c0_i32, %c0_i32_0 : i32, i32
  }
  func.func @transform_5(%arg0: i32, %arg1: i32) -> (i32, i32) {
    %c0_i32 = arith.constant 0 : i32
    %c0_i32_0 = arith.constant 0 : i32
    %c0_i32_1 = arith.constant 0 : i32
    return %c0_i32, %c0_i32_0 : i32, i32
  }
  func.func @transform_6(%arg0: i32, %arg1: i32) -> (i32, i32) {
    %c0_i32 = arith.constant 0 : i32
    %c0_i32_0 = arith.constant 0 : i32
    %c0_i32_1 = arith.constant 0 : i32
    return %c0_i32, %c0_i32_0 : i32, i32
  }
  func.func @transform_7(%arg0: i32, %arg1: i32) -> (i32, i32) {
    %c0_i32 = arith.constant 0 : i32
    %c0_i32_0 = arith.constant 0 : i32
    %c0_i32_1 = arith.constant 0 : i32
    return %c0_i32, %c0_i32_0 : i32, i32
  }
  func.func @transform_8(%arg0: i32, %arg1: i32) -> (i32, i32) {
    %c0_i32 = arith.constant 0 : i32
    %c0_i32_0 = arith.constant 0 : i32
    %c0_i32_1 = arith.constant 0 : i32
    return %c0_i32, %c0_i32_0 : i32, i32
  }
  func.func @transform_9(%arg0: i32, %arg1: i32) -> (i32, i32) {
    %c0_i32 = arith.constant 0 : i32
    %c0_i32_0 = arith.constant 0 : i32
    %c0_i32_1 = arith.constant 0 : i32
    return %c0_i32, %c0_i32_0 : i32, i32
  }
  func.func @transform_10(%arg0: i32, %arg1: i32) -> (i32, i32) {
    %c0_i32 = arith.constant 0 : i32
    %c0_i32_0 = arith.constant 0 : i32
    %c0_i32_1 = arith.constant 0 : i32
    return %c0_i32, %c0_i32_0 : i32, i32
  }
  func.func @transform_11(%arg0: i32, %arg1: i32) -> (i32, i32) {
    %c0_i32 = arith.constant 0 : i32
    %c0_i32_0 = arith.constant 0 : i32
    %c0_i32_1 = arith.constant 0 : i32
    return %c0_i32, %c0_i32_0 : i32, i32
  }
  func.func @transform_12(%arg0: i32, %arg1: i32) -> (i32, i32) {
    %c0_i32 = arith.constant 0 : i32
    %c0_i32_0 = arith.constant 0 : i32
    %c0_i32_1 = arith.constant 0 : i32
    return %c0_i32, %c0_i32_0 : i32, i32
  }
  func.func @transform_13(%arg0: i32, %arg1: i32) -> (i32, i32) {
    %c0_i32 = arith.constant 0 : i32
    %c0_i32_0 = arith.constant 0 : i32
    %c0_i32_1 = arith.constant 0 : i32
    return %c0_i32, %c0_i32_0 : i32, i32
  }
  func.func @transform_14(%arg0: i32, %arg1: i32) -> (i32, i32) {
    %c0_i32 = arith.constant 0 : i32
    %c0_i32_0 = arith.constant 0 : i32
    %c0_i32_1 = arith.constant 0 : i32
    return %c0_i32, %c0_i32_0 : i32, i32
  }
  func.func @transform_15(%arg0: i32, %arg1: i32) -> (i32, i32) {
    %c0_i32 = arith.constant 0 : i32
    %c0_i32_0 = arith.constant 0 : i32
    %c0_i32_1 = arith.constant 0 : i32
    return %c0_i32, %c0_i32_0 : i32, i32
  }
  func.func @transform_16(%arg0: i32, %arg1: i32) -> (i32, i32) {
    %c0_i32 = arith.constant 0 : i32
    %c0_i32_0 = arith.constant 0 : i32
    %c0_i32_1 = arith.constant 0 : i32
    return %c0_i32, %c0_i32_0 : i32, i32
  }
  func.func @transform_17(%arg0: i32, %arg1: i32) -> (i32, i32, i32) {
    %c0_i32 = arith.constant 0 : i32
    %c0_i32_0 = arith.constant 0 : i32
    return %arg0, %arg1, %c0_i32 : i32, i32, i32
  }
}

module attributes {stable_mosaic.version = 11 : i64} {
  func.func @_encoder_layer_kernel(%arg0: i32, %arg1: i32, %arg2: memref<1x8x32xf32, #tpu.memory_space<vmem>>, %arg3: memref<32x32xbf16, #tpu.memory_space<vmem>>, %arg4: memref<1x32xf32, #tpu.memory_space<vmem>>, %arg5: memref<32x32xbf16, #tpu.memory_space<vmem>>, %arg6: memref<1x32xf32, #tpu.memory_space<vmem>>, %arg7: memref<32x32xbf16, #tpu.memory_space<vmem>>, %arg8: memref<1x32xf32, #tpu.memory_space<vmem>>, %arg9: memref<32x32xbf16, #tpu.memory_space<vmem>>, %arg10: memref<1x32xf32, #tpu.memory_space<vmem>>, %arg11: memref<32x64xbf16, #tpu.memory_space<vmem>>, %arg12: memref<1x64xf32, #tpu.memory_space<vmem>>, %arg13: memref<64x32xbf16, #tpu.memory_space<vmem>>, %arg14: memref<1x32xf32, #tpu.memory_space<vmem>>, %arg15: memref<1x32xf32, #tpu.memory_space<vmem>>, %arg16: memref<1x32xf32, #tpu.memory_space<vmem>>, %arg17: memref<1x32xf32, #tpu.memory_space<vmem>>, %arg18: memref<1x32xf32, #tpu.memory_space<vmem>>, %arg19: memref<1x8x32xf32, #tpu.memory_space<vmem>>, %arg20: memref<8x32xbf16, #tpu.memory_space<vmem>>, %arg21: memref<8x32xbf16, #tpu.memory_space<vmem>>, %arg22: memref<8x32xbf16, #tpu.memory_space<vmem>>) attributes {dimension_semantics = [#tpu.dimension_semantics<parallel>, #tpu.dimension_semantics<arbitrary>], iteration_bounds = array<i64: 2, 1>, scalar_prefetch = 0 : i64, scratch_operands = 3 : i64, tpu.core_type = #tpu.core_type<tc>, window_params = [{transform_indices = @transform_0, window_bounds = array<i64: 1, 8, 32>}, {pipeline_mode = #tpu.pipeline_mode<synchronous>, transform_indices = @transform_1, window_bounds = array<i64: 32, 32>}, {pipeline_mode = #tpu.pipeline_mode<synchronous>, transform_indices = @transform_2, window_bounds = array<i64: 1, 32>}, {pipeline_mode = #tpu.pipeline_mode<synchronous>, transform_indices = @transform_3, window_bounds = array<i64: 32, 32>}, {pipeline_mode = #tpu.pipeline_mode<synchronous>, transform_indices = @transform_4, window_bounds = array<i64: 1, 32>}, {pipeline_mode = #tpu.pipeline_mode<synchronous>, transform_indices = @transform_5, window_bounds = array<i64: 32, 32>}, {pipeline_mode = #tpu.pipeline_mode<synchronous>, transform_indices = @transform_6, window_bounds = array<i64: 1, 32>}, {pipeline_mode = #tpu.pipeline_mode<synchronous>, transform_indices = @transform_7, window_bounds = array<i64: 32, 32>}, {pipeline_mode = #tpu.pipeline_mode<synchronous>, transform_indices = @transform_8, window_bounds = array<i64: 1, 32>}, {pipeline_mode = #tpu.pipeline_mode<synchronous>, transform_indices = @transform_9, window_bounds = array<i64: 32, 64>}, {pipeline_mode = #tpu.pipeline_mode<synchronous>, transform_indices = @transform_10, window_bounds = array<i64: 1, 64>}, {pipeline_mode = #tpu.pipeline_mode<synchronous>, transform_indices = @transform_11, window_bounds = array<i64: 64, 32>}, {pipeline_mode = #tpu.pipeline_mode<synchronous>, transform_indices = @transform_12, window_bounds = array<i64: 1, 32>}, {pipeline_mode = #tpu.pipeline_mode<synchronous>, transform_indices = @transform_13, window_bounds = array<i64: 1, 32>}, {pipeline_mode = #tpu.pipeline_mode<synchronous>, transform_indices = @transform_14, window_bounds = array<i64: 1, 32>}, {pipeline_mode = #tpu.pipeline_mode<synchronous>, transform_indices = @transform_15, window_bounds = array<i64: 1, 32>}, {pipeline_mode = #tpu.pipeline_mode<synchronous>, transform_indices = @transform_16, window_bounds = array<i64: 1, 32>}, {transform_indices = @transform_17, window_bounds = array<i64: 1, 8, 32>}]} {
    %c0_i32 = arith.constant 0 : i32
    %0 = arith.cmpi eq, %arg1, %c0_i32 : i32
    %1 = arith.extui %0 : i1 to i32
    %c0_i32_0 = arith.constant 0 : i32
    %2 = arith.cmpi ne, %1, %c0_i32_0 : i32
    scf.if %2 {
      %c0_82 = arith.constant 0 : index
      %c0_83 = arith.constant 0 : index
      %c0_84 = arith.constant 0 : index
      %160 = vector.load %arg2[%c0_82, %c0_83, %c0_84] : memref<1x8x32xf32, #tpu.memory_space<vmem>>, vector<1x8x32xf32>
      %161 = vector.shape_cast %160 : vector<1x8x32xf32> to vector<8x32xf32>
      %162 = arith.truncf %161 : vector<8x32xf32> to vector<8x32xbf16>
      %c0_85 = arith.constant 0 : index
      %c0_86 = arith.constant 0 : index
      %163 = vector.load %arg5[%c0_85, %c0_86] : memref<32x32xbf16, #tpu.memory_space<vmem>>, vector<32x32xbf16>
      %cst_87 = arith.constant dense<0.000000e+00> : vector<8x32xf32>
      %164 = tpu.matmul %162, %163, %cst_87 {dimension_numbers = #tpu.dot_dimension_numbers<[1], [0], [0], [1], [0, 0, 1, 1], [], []>} : vector<8x32xbf16>, vector<32x32xbf16>, vector<8x32xf32> -> vector<8x32xf32>
      %c0_88 = arith.constant 0 : index
      %c0_89 = arith.constant 0 : index
      %165 = vector.load %arg6[%c0_88, %c0_89] : memref<1x32xf32, #tpu.memory_space<vmem>>, vector<1x32xf32>
      %166 = vector.broadcast %165 : vector<1x32xf32> to vector<8x32xf32>
      %167 = arith.addf %164, %166 : vector<8x32xf32>
      %168 = arith.truncf %167 : vector<8x32xf32> to vector<8x32xbf16>
      %c0_90 = arith.constant 0 : index
      %c0_91 = arith.constant 0 : index
      %169 = vector.load %arg20[%c0_90, %c0_91] : memref<8x32xbf16, #tpu.memory_space<vmem>>, vector<8x32xbf16>
      tpu.vector_store %arg20[%c0_90, %c0_91], %168 {strides = array<i32>} : memref<8x32xbf16, #tpu.memory_space<vmem>>, vector<8x32xbf16>,
      %c0_92 = arith.constant 0 : index
      %c0_93 = arith.constant 0 : index
      %170 = vector.load %arg7[%c0_92, %c0_93] : memref<32x32xbf16, #tpu.memory_space<vmem>>, vector<32x32xbf16>
      %cst_94 = arith.constant dense<0.000000e+00> : vector<8x32xf32>
      %171 = tpu.matmul %162, %170, %cst_94 {dimension_numbers = #tpu.dot_dimension_numbers<[1], [0], [0], [1], [0, 0, 1, 1], [], []>} : vector<8x32xbf16>, vector<32x32xbf16>, vector<8x32xf32> -> vector<8x32xf32>
      %c0_95 = arith.constant 0 : index
      %c0_96 = arith.constant 0 : index
      %172 = vector.load %arg8[%c0_95, %c0_96] : memref<1x32xf32, #tpu.memory_space<vmem>>, vector<1x32xf32>
      %173 = vector.broadcast %172 : vector<1x32xf32> to vector<8x32xf32>
      %174 = arith.addf %171, %173 : vector<8x32xf32>
      %175 = arith.truncf %174 : vector<8x32xf32> to vector<8x32xbf16>
      %c0_97 = arith.constant 0 : index
      %c0_98 = arith.constant 0 : index
      %176 = vector.load %arg21[%c0_97, %c0_98] : memref<8x32xbf16, #tpu.memory_space<vmem>>, vector<8x32xbf16>
      tpu.vector_store %arg21[%c0_97, %c0_98], %175 {strides = array<i32>} : memref<8x32xbf16, #tpu.memory_space<vmem>>, vector<8x32xbf16>,
    } else {
    }
    %c8_i32 = arith.constant 8 : i32
    %3 = arith.muli %arg1, %c8_i32 : i32
    %4 = tpu.assume_multiple %3, 8 : i32
    %c0 = arith.constant 0 : index
    %5 = arith.index_cast %4 : i32 to index
    %c0_1 = arith.constant 0 : index
    %6 = vector.load %arg2[%c0, %5, %c0_1] : memref<1x8x32xf32, #tpu.memory_space<vmem>>, vector<1x8x32xf32>
    %7 = vector.shape_cast %6 : vector<1x8x32xf32> to vector<8x32xf32>
    %8 = arith.truncf %7 : vector<8x32xf32> to vector<8x32xbf16>
    %c0_2 = arith.constant 0 : index
    %c0_3 = arith.constant 0 : index
    %9 = vector.load %arg3[%c0_2, %c0_3] : memref<32x32xbf16, #tpu.memory_space<vmem>>, vector<32x32xbf16>
    %cst = arith.constant dense<0.000000e+00> : vector<8x32xf32>
    %10 = tpu.matmul %8, %9, %cst {dimension_numbers = #tpu.dot_dimension_numbers<[1], [0], [0], [1], [0, 0, 1, 1], [], []>} : vector<8x32xbf16>, vector<32x32xbf16>, vector<8x32xf32> -> vector<8x32xf32>
    %c0_4 = arith.constant 0 : index
    %c0_5 = arith.constant 0 : index
    %11 = vector.load %arg4[%c0_4, %c0_5] : memref<1x32xf32, #tpu.memory_space<vmem>>, vector<1x32xf32>
    %12 = vector.broadcast %11 : vector<1x32xf32> to vector<8x32xf32>
    %13 = arith.addf %10, %12 : vector<8x32xf32>
    %14 = arith.truncf %13 : vector<8x32xf32> to vector<8x32xbf16>
    %15 = vector.extract_strided_slice %14 {offsets = [0, 0], sizes = [8, 8], strides = [1, 1]} : vector<8x32xbf16> to vector<8x8xbf16>
    %c0_6 = arith.constant 0 : index
    %c0_7 = arith.constant 0 : index
    %16 = vector.load %arg20[%c0_6, %c0_7] : memref<8x32xbf16, #tpu.memory_space<vmem>>, vector<8x8xbf16>
    %cst_8 = arith.constant dense<0.000000e+00> : vector<8x8xf32>
    %17 = tpu.matmul %15, %16, %cst_8 {dimension_numbers = #tpu.dot_dimension_numbers<[1], [1], [0], [0], [0, 0, 1, 0], [], []>} : vector<8x8xbf16>, vector<8x8xbf16>, vector<8x8xf32> -> vector<8x8xf32>
    %cst_9 = arith.constant dense<0xFF800000> : vector<8xf32>
    %18 = vector.multi_reduction <maximumf>, %17, %cst_9 [1] : vector<8x8xf32> to vector<8xf32>
    %19 = vector.shape_cast %18 : vector<8xf32> to vector<8x1xf32>
    %20 = vector.broadcast %19 : vector<8x1xf32> to vector<8x8xf32>
    %21 = arith.subf %17, %20 : vector<8x8xf32>
    %22 = math.exp %21 : vector<8x8xf32>
    %cst_10 = arith.constant dense<0.000000e+00> : vector<8xf32>
    %23 = vector.multi_reduction <add>, %22, %cst_10 [1] : vector<8x8xf32> to vector<8xf32>
    %24 = vector.shape_cast %23 : vector<8xf32> to vector<8x1xf32>
    %25 = tpu.reciprocal %24 {approx = true} : vector<8x1xf32> -> vector<8x1xf32>
    %26 = vector.broadcast %25 : vector<8x1xf32> to vector<8x8xf32>
    %27 = arith.mulf %22, %26 : vector<8x8xf32>
    %28 = arith.truncf %27 : vector<8x8xf32> to vector<8x8xbf16>
    %c0_11 = arith.constant 0 : index
    %c0_12 = arith.constant 0 : index
    %29 = vector.load %arg21[%c0_11, %c0_12] : memref<8x32xbf16, #tpu.memory_space<vmem>>, vector<8x8xbf16>
    %cst_13 = arith.constant dense<0.000000e+00> : vector<8x8xf32>
    %30 = tpu.matmul %28, %29, %cst_13 {dimension_numbers = #tpu.dot_dimension_numbers<[1], [0], [0], [1], [0, 0, 1, 1], [], []>} : vector<8x8xbf16>, vector<8x8xbf16>, vector<8x8xf32> -> vector<8x8xf32>
    %31 = arith.truncf %30 : vector<8x8xf32> to vector<8x8xbf16>
    %c0_14 = arith.constant 0 : index
    %c0_15 = arith.constant 0 : index
    %32 = vector.load %arg22[%c0_14, %c0_15] : memref<8x32xbf16, #tpu.memory_space<vmem>>, vector<8x8xbf16>
    tpu.vector_store %arg22[%c0_14, %c0_15], %31 {strides = array<i32>} : memref<8x32xbf16, #tpu.memory_space<vmem>>, vector<8x8xbf16>,
    %33 = vector.extract_strided_slice %14 {offsets = [0, 8], sizes = [8, 8], strides = [1, 1]} : vector<8x32xbf16> to vector<8x8xbf16>
    %c0_16 = arith.constant 0 : index
    %c8 = arith.constant 8 : index
    %34 = vector.load %arg20[%c0_16, %c8] : memref<8x32xbf16, #tpu.memory_space<vmem>>, vector<8x8xbf16>
    %cst_17 = arith.constant dense<0.000000e+00> : vector<8x8xf32>
    %35 = tpu.matmul %33, %34, %cst_17 {dimension_numbers = #tpu.dot_dimension_numbers<[1], [1], [0], [0], [0, 0, 1, 0], [], []>} : vector<8x8xbf16>, vector<8x8xbf16>, vector<8x8xf32> -> vector<8x8xf32>
    %cst_18 = arith.constant dense<0xFF800000> : vector<8xf32>
    %36 = vector.multi_reduction <maximumf>, %35, %cst_18 [1] : vector<8x8xf32> to vector<8xf32>
    %37 = vector.shape_cast %36 : vector<8xf32> to vector<8x1xf32>
    %38 = vector.broadcast %37 : vector<8x1xf32> to vector<8x8xf32>
    %39 = arith.subf %35, %38 : vector<8x8xf32>
    %40 = math.exp %39 : vector<8x8xf32>
    %cst_19 = arith.constant dense<0.000000e+00> : vector<8xf32>
    %41 = vector.multi_reduction <add>, %40, %cst_19 [1] : vector<8x8xf32> to vector<8xf32>
    %42 = vector.shape_cast %41 : vector<8xf32> to vector<8x1xf32>
    %43 = tpu.reciprocal %42 {approx = true} : vector<8x1xf32> -> vector<8x1xf32>
    %44 = vector.broadcast %43 : vector<8x1xf32> to vector<8x8xf32>
    %45 = arith.mulf %40, %44 : vector<8x8xf32>
    %46 = arith.truncf %45 : vector<8x8xf32> to vector<8x8xbf16>
    %c0_20 = arith.constant 0 : index
    %c8_21 = arith.constant 8 : index
    %47 = vector.load %arg21[%c0_20, %c8_21] : memref<8x32xbf16, #tpu.memory_space<vmem>>, vector<8x8xbf16>
    %cst_22 = arith.constant dense<0.000000e+00> : vector<8x8xf32>
    %48 = tpu.matmul %46, %47, %cst_22 {dimension_numbers = #tpu.dot_dimension_numbers<[1], [0], [0], [1], [0, 0, 1, 1], [], []>} : vector<8x8xbf16>, vector<8x8xbf16>, vector<8x8xf32> -> vector<8x8xf32>
    %49 = arith.truncf %48 : vector<8x8xf32> to vector<8x8xbf16>
    %c0_23 = arith.constant 0 : index
    %c8_24 = arith.constant 8 : index
    %50 = vector.load %arg22[%c0_23, %c8_24] : memref<8x32xbf16, #tpu.memory_space<vmem>>, vector<8x8xbf16>
    tpu.vector_store %arg22[%c0_23, %c8_24], %49 {strides = array<i32>} : memref<8x32xbf16, #tpu.memory_space<vmem>>, vector<8x8xbf16>,
    %51 = vector.extract_strided_slice %14 {offsets = [0, 16], sizes = [8, 8], strides = [1, 1]} : vector<8x32xbf16> to vector<8x8xbf16>
    %c0_25 = arith.constant 0 : index
    %c16 = arith.constant 16 : index
    %52 = vector.load %arg20[%c0_25, %c16] : memref<8x32xbf16, #tpu.memory_space<vmem>>, vector<8x8xbf16>
    %cst_26 = arith.constant dense<0.000000e+00> : vector<8x8xf32>
    %53 = tpu.matmul %51, %52, %cst_26 {dimension_numbers = #tpu.dot_dimension_numbers<[1], [1], [0], [0], [0, 0, 1, 0], [], []>} : vector<8x8xbf16>, vector<8x8xbf16>, vector<8x8xf32> -> vector<8x8xf32>
    %cst_27 = arith.constant dense<0xFF800000> : vector<8xf32>
    %54 = vector.multi_reduction <maximumf>, %53, %cst_27 [1] : vector<8x8xf32> to vector<8xf32>
    %55 = vector.shape_cast %54 : vector<8xf32> to vector<8x1xf32>
    %56 = vector.broadcast %55 : vector<8x1xf32> to vector<8x8xf32>
    %57 = arith.subf %53, %56 : vector<8x8xf32>
    %58 = math.exp %57 : vector<8x8xf32>
    %cst_28 = arith.constant dense<0.000000e+00> : vector<8xf32>
    %59 = vector.multi_reduction <add>, %58, %cst_28 [1] : vector<8x8xf32> to vector<8xf32>
    %60 = vector.shape_cast %59 : vector<8xf32> to vector<8x1xf32>
    %61 = tpu.reciprocal %60 {approx = true} : vector<8x1xf32> -> vector<8x1xf32>
    %62 = vector.broadcast %61 : vector<8x1xf32> to vector<8x8xf32>
    %63 = arith.mulf %58, %62 : vector<8x8xf32>
    %64 = arith.truncf %63 : vector<8x8xf32> to vector<8x8xbf16>
    %c0_29 = arith.constant 0 : index
    %c16_30 = arith.constant 16 : index
    %65 = vector.load %arg21[%c0_29, %c16_30] : memref<8x32xbf16, #tpu.memory_space<vmem>>, vector<8x8xbf16>
    %cst_31 = arith.constant dense<0.000000e+00> : vector<8x8xf32>
    %66 = tpu.matmul %64, %65, %cst_31 {dimension_numbers = #tpu.dot_dimension_numbers<[1], [0], [0], [1], [0, 0, 1, 1], [], []>} : vector<8x8xbf16>, vector<8x8xbf16>, vector<8x8xf32> -> vector<8x8xf32>
    %67 = arith.truncf %66 : vector<8x8xf32> to vector<8x8xbf16>
    %c0_32 = arith.constant 0 : index
    %c16_33 = arith.constant 16 : index
    %68 = vector.load %arg22[%c0_32, %c16_33] : memref<8x32xbf16, #tpu.memory_space<vmem>>, vector<8x8xbf16>
    tpu.vector_store %arg22[%c0_32, %c16_33], %67 {strides = array<i32>} : memref<8x32xbf16, #tpu.memory_space<vmem>>, vector<8x8xbf16>,
    %69 = vector.extract_strided_slice %14 {offsets = [0, 24], sizes = [8, 8], strides = [1, 1]} : vector<8x32xbf16> to vector<8x8xbf16>
    %c0_34 = arith.constant 0 : index
    %c24 = arith.constant 24 : index
    %70 = vector.load %arg20[%c0_34, %c24] : memref<8x32xbf16, #tpu.memory_space<vmem>>, vector<8x8xbf16>
    %cst_35 = arith.constant dense<0.000000e+00> : vector<8x8xf32>
    %71 = tpu.matmul %69, %70, %cst_35 {dimension_numbers = #tpu.dot_dimension_numbers<[1], [1], [0], [0], [0, 0, 1, 0], [], []>} : vector<8x8xbf16>, vector<8x8xbf16>, vector<8x8xf32> -> vector<8x8xf32>
    %cst_36 = arith.constant dense<0xFF800000> : vector<8xf32>
    %72 = vector.multi_reduction <maximumf>, %71, %cst_36 [1] : vector<8x8xf32> to vector<8xf32>
    %73 = vector.shape_cast %72 : vector<8xf32> to vector<8x1xf32>
    %74 = vector.broadcast %73 : vector<8x1xf32> to vector<8x8xf32>
    %75 = arith.subf %71, %74 : vector<8x8xf32>
    %76 = math.exp %75 : vector<8x8xf32>
    %cst_37 = arith.constant dense<0.000000e+00> : vector<8xf32>
    %77 = vector.multi_reduction <add>, %76, %cst_37 [1] : vector<8x8xf32> to vector<8xf32>
    %78 = vector.shape_cast %77 : vector<8xf32> to vector<8x1xf32>
    %79 = tpu.reciprocal %78 {approx = true} : vector<8x1xf32> -> vector<8x1xf32>
    %80 = vector.broadcast %79 : vector<8x1xf32> to vector<8x8xf32>
    %81 = arith.mulf %76, %80 : vector<8x8xf32>
    %82 = arith.truncf %81 : vector<8x8xf32> to vector<8x8xbf16>
    %c0_38 = arith.constant 0 : index
    %c24_39 = arith.constant 24 : index
    %83 = vector.load %arg21[%c0_38, %c24_39] : memref<8x32xbf16, #tpu.memory_space<vmem>>, vector<8x8xbf16>
    %cst_40 = arith.constant dense<0.000000e+00> : vector<8x8xf32>
    %84 = tpu.matmul %82, %83, %cst_40 {dimension_numbers = #tpu.dot_dimension_numbers<[1], [0], [0], [1], [0, 0, 1, 1], [], []>} : vector<8x8xbf16>, vector<8x8xbf16>, vector<8x8xf32> -> vector<8x8xf32>
    %85 = arith.truncf %84 : vector<8x8xf32> to vector<8x8xbf16>
    %c0_41 = arith.constant 0 : index
    %c24_42 = arith.constant 24 : index
    %86 = vector.load %arg22[%c0_41, %c24_42] : memref<8x32xbf16, #tpu.memory_space<vmem>>, vector<8x8xbf16>
    tpu.vector_store %arg22[%c0_41, %c24_42], %85 {strides = array<i32>} : memref<8x32xbf16, #tpu.memory_space<vmem>>, vector<8x8xbf16>,
    %c0_43 = arith.constant 0 : index
    %c0_44 = arith.constant 0 : index
    %87 = vector.load %arg22[%c0_43, %c0_44] : memref<8x32xbf16, #tpu.memory_space<vmem>>, vector<8x32xbf16>
    %c0_45 = arith.constant 0 : index
    %c0_46 = arith.constant 0 : index
    %88 = vector.load %arg9[%c0_45, %c0_46] : memref<32x32xbf16, #tpu.memory_space<vmem>>, vector<32x32xbf16>
    %cst_47 = arith.constant dense<0.000000e+00> : vector<8x32xf32>
    %89 = tpu.matmul %87, %88, %cst_47 {dimension_numbers = #tpu.dot_dimension_numbers<[1], [0], [0], [1], [0, 0, 1, 1], [], []>} : vector<8x32xbf16>, vector<32x32xbf16>, vector<8x32xf32> -> vector<8x32xf32>
    %c0_48 = arith.constant 0 : index
    %c0_49 = arith.constant 0 : index
    %90 = vector.load %arg10[%c0_48, %c0_49] : memref<1x32xf32, #tpu.memory_space<vmem>>, vector<1x32xf32>
    %91 = vector.broadcast %90 : vector<1x32xf32> to vector<8x32xf32>
    %92 = arith.addf %89, %91 : vector<8x32xf32>
    %93 = arith.addf %7, %92 : vector<8x32xf32>
    %c0_50 = arith.constant 0 : index
    %c0_51 = arith.constant 0 : index
    %94 = vector.load %arg15[%c0_50, %c0_51] : memref<1x32xf32, #tpu.memory_space<vmem>>, vector<1x32xf32>
    %c0_52 = arith.constant 0 : index
    %c0_53 = arith.constant 0 : index
    %95 = vector.load %arg16[%c0_52, %c0_53] : memref<1x32xf32, #tpu.memory_space<vmem>>, vector<1x32xf32>
    %cst_54 = arith.constant dense<0.000000e+00> : vector<8xf32>
    %96 = vector.multi_reduction <add>, %93, %cst_54 [1] : vector<8x32xf32> to vector<8xf32>
    %97 = vector.shape_cast %96 : vector<8xf32> to vector<8x1xf32>
    %cst_55 = arith.constant 3.200000e+01 : f32
    %98 = vector.broadcast %cst_55 : f32 to vector<8x1xf32>
    %99 = arith.divf %97, %98 : vector<8x1xf32>
    %100 = arith.mulf %93, %93 : vector<8x32xf32>
    %cst_56 = arith.constant dense<0.000000e+00> : vector<8xf32>
    %101 = vector.multi_reduction <add>, %100, %cst_56 [1] : vector<8x32xf32> to vector<8xf32>
    %102 = vector.shape_cast %101 : vector<8xf32> to vector<8x1xf32>
    %cst_57 = arith.constant 3.200000e+01 : f32
    %103 = vector.broadcast %cst_57 : f32 to vector<8x1xf32>
    %104 = arith.divf %102, %103 : vector<8x1xf32>
    %105 = arith.mulf %99, %99 : vector<8x1xf32>
    %106 = arith.subf %104, %105 : vector<8x1xf32>
    %107 = vector.broadcast %99 : vector<8x1xf32> to vector<8x32xf32>
    %108 = arith.subf %93, %107 : vector<8x32xf32>
    %cst_58 = arith.constant 9.99999974E-6 : f32
    %109 = vector.broadcast %cst_58 : f32 to vector<8x1xf32>
    %110 = arith.addf %106, %109 : vector<8x1xf32>
    %111 = math.rsqrt %110 : vector<8x1xf32>
    %112 = vector.broadcast %111 : vector<8x1xf32> to vector<8x32xf32>
    %113 = arith.mulf %108, %112 : vector<8x32xf32>
    %114 = vector.broadcast %94 : vector<1x32xf32> to vector<8x32xf32>
    %115 = arith.mulf %113, %114 : vector<8x32xf32>
    %116 = vector.broadcast %95 : vector<1x32xf32> to vector<8x32xf32>
    %117 = arith.addf %115, %116 : vector<8x32xf32>
    %118 = arith.truncf %117 : vector<8x32xf32> to vector<8x32xbf16>
    %c0_59 = arith.constant 0 : index
    %c0_60 = arith.constant 0 : index
    %119 = vector.load %arg11[%c0_59, %c0_60] : memref<32x64xbf16, #tpu.memory_space<vmem>>, vector<32x64xbf16>
    %cst_61 = arith.constant dense<0.000000e+00> : vector<8x64xf32>
    %120 = tpu.matmul %118, %119, %cst_61 {dimension_numbers = #tpu.dot_dimension_numbers<[1], [0], [0], [1], [0, 0, 1, 1], [], []>} : vector<8x32xbf16>, vector<32x64xbf16>, vector<8x64xf32> -> vector<8x64xf32>
    %c0_62 = arith.constant 0 : index
    %c0_63 = arith.constant 0 : index
    %121 = vector.load %arg12[%c0_62, %c0_63] : memref<1x64xf32, #tpu.memory_space<vmem>>, vector<1x64xf32>
    %122 = vector.broadcast %121 : vector<1x64xf32> to vector<8x64xf32>
    %123 = arith.addf %120, %122 : vector<8x64xf32>
    %cst_64 = arith.constant 0.000000e+00 : f32
    %124 = vector.broadcast %cst_64 : f32 to vector<8x64xf32>
    %125 = arith.maximumf %123, %124 : vector<8x64xf32>
    %126 = arith.truncf %125 : vector<8x64xf32> to vector<8x64xbf16>
    %c0_65 = arith.constant 0 : index
    %c0_66 = arith.constant 0 : index
    %127 = vector.load %arg13[%c0_65, %c0_66] : memref<64x32xbf16, #tpu.memory_space<vmem>>, vector<64x32xbf16>
    %cst_67 = arith.constant dense<0.000000e+00> : vector<8x32xf32>
    %128 = tpu.matmul %126, %127, %cst_67 {dimension_numbers = #tpu.dot_dimension_numbers<[1], [0], [0], [1], [0, 0, 1, 1], [], []>} : vector<8x64xbf16>, vector<64x32xbf16>, vector<8x32xf32> -> vector<8x32xf32>
    %c0_68 = arith.constant 0 : index
    %c0_69 = arith.constant 0 : index
    %129 = vector.load %arg14[%c0_68, %c0_69] : memref<1x32xf32, #tpu.memory_space<vmem>>, vector<1x32xf32>
    %130 = vector.broadcast %129 : vector<1x32xf32> to vector<8x32xf32>
    %131 = arith.addf %128, %130 : vector<8x32xf32>
    %132 = arith.addf %117, %131 : vector<8x32xf32>
    %c0_70 = arith.constant 0 : index
    %c0_71 = arith.constant 0 : index
    %133 = vector.load %arg17[%c0_70, %c0_71] : memref<1x32xf32, #tpu.memory_space<vmem>>, vector<1x32xf32>
    %c0_72 = arith.constant 0 : index
    %c0_73 = arith.constant 0 : index
    %134 = vector.load %arg18[%c0_72, %c0_73] : memref<1x32xf32, #tpu.memory_space<vmem>>, vector<1x32xf32>
    %cst_74 = arith.constant dense<0.000000e+00> : vector<8xf32>
    %135 = vector.multi_reduction <add>, %132, %cst_74 [1] : vector<8x32xf32> to vector<8xf32>
    %136 = vector.shape_cast %135 : vector<8xf32> to vector<8x1xf32>
    %cst_75 = arith.constant 3.200000e+01 : f32
    %137 = vector.broadcast %cst_75 : f32 to vector<8x1xf32>
    %138 = arith.divf %136, %137 : vector<8x1xf32>
    %139 = arith.mulf %132, %132 : vector<8x32xf32>
    %cst_76 = arith.constant dense<0.000000e+00> : vector<8xf32>
    %140 = vector.multi_reduction <add>, %139, %cst_76 [1] : vector<8x32xf32> to vector<8xf32>
    %141 = vector.shape_cast %140 : vector<8xf32> to vector<8x1xf32>
    %cst_77 = arith.constant 3.200000e+01 : f32
    %142 = vector.broadcast %cst_77 : f32 to vector<8x1xf32>
    %143 = arith.divf %141, %142 : vector<8x1xf32>
    %144 = arith.mulf %138, %138 : vector<8x1xf32>
    %145 = arith.subf %143, %144 : vector<8x1xf32>
    %146 = vector.broadcast %138 : vector<8x1xf32> to vector<8x32xf32>
    %147 = arith.subf %132, %146 : vector<8x32xf32>
    %cst_78 = arith.constant 9.99999974E-6 : f32
    %148 = vector.broadcast %cst_78 : f32 to vector<8x1xf32>
    %149 = arith.addf %145, %148 : vector<8x1xf32>
    %150 = math.rsqrt %149 : vector<8x1xf32>
    %151 = vector.broadcast %150 : vector<8x1xf32> to vector<8x32xf32>
    %152 = arith.mulf %147, %151 : vector<8x32xf32>
    %153 = vector.broadcast %133 : vector<1x32xf32> to vector<8x32xf32>
    %154 = arith.mulf %152, %153 : vector<8x32xf32>
    %155 = vector.broadcast %134 : vector<1x32xf32> to vector<8x32xf32>
    %156 = arith.addf %154, %155 : vector<8x32xf32>
    %c0_79 = arith.constant 0 : index
    %c0_80 = arith.constant 0 : index
    %c0_81 = arith.constant 0 : index
    %157 = vector.load %arg19[%c0_79, %c0_80, %c0_81] : memref<1x8x32xf32, #tpu.memory_space<vmem>>, vector<1x8x32xf32>
    %158 = vector.shape_cast %157 : vector<1x8x32xf32> to vector<8x32xf32>
    %159 = vector.shape_cast %156 : vector<8x32xf32> to vector<1x8x32xf32>
    tpu.vector_store %arg19[%c0_79, %c0_80, %c0_81], %159 {strides = array<i32>} : memref<1x8x32xf32, #tpu.memory_space<vmem>>, vector<1x8x32xf32>,
    return
  }
  func.func @transform_0(%arg0: i32, %arg1: i32) -> (i32, i32, i32) {
    %c0_i32 = arith.constant 0 : i32
    %c0_i32_0 = arith.constant 0 : i32
    %c0_i32_1 = arith.constant 0 : i32
    return %arg0, %c0_i32, %c0_i32_0 : i32, i32, i32
  }
  func.func @transform_1(%arg0: i32, %arg1: i32) -> (i32, i32) {
    %c0_i32 = arith.constant 0 : i32
    %c0_i32_0 = arith.constant 0 : i32
    %c0_i32_1 = arith.constant 0 : i32
    return %c0_i32, %c0_i32_0 : i32, i32
  }
  func.func @transform_2(%arg0: i32, %arg1: i32) -> (i32, i32) {
    %c0_i32 = arith.constant 0 : i32
    %c0_i32_0 = arith.constant 0 : i32
    %c0_i32_1 = arith.constant 0 : i32
    return %c0_i32, %c0_i32_0 : i32, i32
  }
  func.func @transform_3(%arg0: i32, %arg1: i32) -> (i32, i32) {
    %c0_i32 = arith.constant 0 : i32
    %c0_i32_0 = arith.constant 0 : i32
    %c0_i32_1 = arith.constant 0 : i32
    return %c0_i32, %c0_i32_0 : i32, i32
  }
  func.func @transform_4(%arg0: i32, %arg1: i32) -> (i32, i32) {
    %c0_i32 = arith.constant 0 : i32
    %c0_i32_0 = arith.constant 0 : i32
    %c0_i32_1 = arith.constant 0 : i32
    return %c0_i32, %c0_i32_0 : i32, i32
  }
  func.func @transform_5(%arg0: i32, %arg1: i32) -> (i32, i32) {
    %c0_i32 = arith.constant 0 : i32
    %c0_i32_0 = arith.constant 0 : i32
    %c0_i32_1 = arith.constant 0 : i32
    return %c0_i32, %c0_i32_0 : i32, i32
  }
  func.func @transform_6(%arg0: i32, %arg1: i32) -> (i32, i32) {
    %c0_i32 = arith.constant 0 : i32
    %c0_i32_0 = arith.constant 0 : i32
    %c0_i32_1 = arith.constant 0 : i32
    return %c0_i32, %c0_i32_0 : i32, i32
  }
  func.func @transform_7(%arg0: i32, %arg1: i32) -> (i32, i32) {
    %c0_i32 = arith.constant 0 : i32
    %c0_i32_0 = arith.constant 0 : i32
    %c0_i32_1 = arith.constant 0 : i32
    return %c0_i32, %c0_i32_0 : i32, i32
  }
  func.func @transform_8(%arg0: i32, %arg1: i32) -> (i32, i32) {
    %c0_i32 = arith.constant 0 : i32
    %c0_i32_0 = arith.constant 0 : i32
    %c0_i32_1 = arith.constant 0 : i32
    return %c0_i32, %c0_i32_0 : i32, i32
  }
  func.func @transform_9(%arg0: i32, %arg1: i32) -> (i32, i32) {
    %c0_i32 = arith.constant 0 : i32
    %c0_i32_0 = arith.constant 0 : i32
    %c0_i32_1 = arith.constant 0 : i32
    return %c0_i32, %c0_i32_0 : i32, i32
  }
  func.func @transform_10(%arg0: i32, %arg1: i32) -> (i32, i32) {
    %c0_i32 = arith.constant 0 : i32
    %c0_i32_0 = arith.constant 0 : i32
    %c0_i32_1 = arith.constant 0 : i32
    return %c0_i32, %c0_i32_0 : i32, i32
  }
  func.func @transform_11(%arg0: i32, %arg1: i32) -> (i32, i32) {
    %c0_i32 = arith.constant 0 : i32
    %c0_i32_0 = arith.constant 0 : i32
    %c0_i32_1 = arith.constant 0 : i32
    return %c0_i32, %c0_i32_0 : i32, i32
  }
  func.func @transform_12(%arg0: i32, %arg1: i32) -> (i32, i32) {
    %c0_i32 = arith.constant 0 : i32
    %c0_i32_0 = arith.constant 0 : i32
    %c0_i32_1 = arith.constant 0 : i32
    return %c0_i32, %c0_i32_0 : i32, i32
  }
  func.func @transform_13(%arg0: i32, %arg1: i32) -> (i32, i32) {
    %c0_i32 = arith.constant 0 : i32
    %c0_i32_0 = arith.constant 0 : i32
    %c0_i32_1 = arith.constant 0 : i32
    return %c0_i32, %c0_i32_0 : i32, i32
  }
  func.func @transform_14(%arg0: i32, %arg1: i32) -> (i32, i32) {
    %c0_i32 = arith.constant 0 : i32
    %c0_i32_0 = arith.constant 0 : i32
    %c0_i32_1 = arith.constant 0 : i32
    return %c0_i32, %c0_i32_0 : i32, i32
  }
  func.func @transform_15(%arg0: i32, %arg1: i32) -> (i32, i32) {
    %c0_i32 = arith.constant 0 : i32
    %c0_i32_0 = arith.constant 0 : i32
    %c0_i32_1 = arith.constant 0 : i32
    return %c0_i32, %c0_i32_0 : i32, i32
  }
  func.func @transform_16(%arg0: i32, %arg1: i32) -> (i32, i32) {
    %c0_i32 = arith.constant 0 : i32
    %c0_i32_0 = arith.constant 0 : i32
    %c0_i32_1 = arith.constant 0 : i32
    return %c0_i32, %c0_i32_0 : i32, i32
  }
  func.func @transform_17(%arg0: i32, %arg1: i32) -> (i32, i32, i32) {
    %c0_i32 = arith.constant 0 : i32
    %c0_i32_0 = arith.constant 0 : i32
    return %arg0, %arg1, %c0_i32 : i32, i32, i32
  }
}

</mosaic_0001>

<bundles_post_ra>
// kernel: tpu_custom_call.1
= control target key start
LH: loop header
LB: loop body
LE: loop exit
PB: predicated region body
PF: predicated region fallthrough
CT: control target
= control target key end

     0   :  { %s2706_s0 = inlined_call_operand.vmem [shape: f32[2,8,32], index: 0, kind: input, shape index: {}]   ;;  %s2707_s1 = inlined_call_operand.vmem [shape: bf16[32,32], index: 1, kind: input, shape index: {}]   ;;  %s2708_s2 = inlined_call_operand.vmem [shape: f32[1,32], index: 2, kind: input, shape index: {}]   ;;  %s2709_s3 = inlined_call_operand.vmem [shape: bf16[32,32], index: 3, kind: input, shape index: {}]   ;;  %s2710_s4 = inlined_call_operand.vmem [shape: f32[1,32], index: 4, kind: input, shape index: {}]   ;;  %s2711_s5 = inlined_call_operand.hbm [shape: bf16[32,32], index: 5, kind: input, shape index: {}]   ;;  %s2712_s6 = inlined_call_operand.vmem [shape: f32[1,32], index: 6, kind: input, shape index: {}]   ;;  %s2713_s7 = inlined_call_operand.hbm [shape: bf16[32,32], index: 7, kind: input, shape index: {}]   ;;  %s2714_s8 = inlined_call_operand.vmem [shape: f32[1,32], index: 8, kind: input, shape index: {}]   ;;  %s2715_s9 = inlined_call_operand.hbm [shape: bf16[32,64], index: 9, kind: input, shape index: {}]   ;;  %s2716_s10 = inlined_call_operand.hbm [shape: f32[1,64], index: 10, kind: input, shape index: {}]   ;;  %s2717_s11 = inlined_call_operand.vmem [shape: bf16[64,32], index: 11, kind: input, shape index: {}]   ;;  %s2718_s12 = inlined_call_operand.vmem [shape: f32[1,32], index: 12, kind: input, shape index: {}]   ;;  %s2719_s13 = inlined_call_operand.vmem [shape: f32[1,32], index: 13, kind: input, shape index: {}]   ;;  %s2720_s14 = inlined_call_operand.vmem [shape: f32[1,32], index: 14, kind: input, shape index: {}]   ;;  %s2721_s15 = inlined_call_operand.vmem [shape: f32[1,32], index: 15, kind: input, shape index: {}]   ;;  %s2722_s16 = inlined_call_operand.vmem [shape: f32[1,32], index: 16, kind: input, shape index: {}]   ;;  %s2723_s17 = inlined_call_operand.hbm [shape: f32[2,8,32], index: 17, kind: output, shape index: {}]  }
   0x1   :  { %2734 = sst [smem:[#allocation25_spill]] %s2706_s0 }
   0x2   :  { %2735 = sst [smem:[#allocation26_spill]] %s2707_s1 }
   0x3   :  { %2736 = sst [smem:[#allocation27_spill]] %s2713_s7 }
   0x4   :  { %2737 = sst [smem:[#allocation28_spill]] %s2723_s17 }
   0x5   :  { %22 = vsyncpa [#allocation6], 0 }
   0x6   :  { %23 = vsyncpa [#allocation9], 0 }
   0x7   :  { %24 = vsyncpa [#allocation12], 0 }
   0x8   :  { %25 = vsyncpa [#allocation7], 0 }
   0x9   :  { %27 = vsyncpa [#allocation7 + $0x1], 0  ;;  %s2383_s24 = smov 0   ;;  %s2385_s25 = smov 0  }
   0xa   :  { %s2387_s26 = smov 0   ;;  %s2389_s27 = smov 0  }
   0xb   :  { %s2391_s28 = smov 0   ;;  %s2393_s29 = smov 0  }
   0xc LB: > { %2738 = sst [smem:[#allocation18_spill]] %s2256_s24  ;;  %s1733_s0 = sadd.s32 4294967295, %s2276_s29   ;;  %s2276_s29 = sphi %s2393_s29, %s33_s29   ;;  %s2272_s28 = sphi %s2391_s28, %s2760_s28   ;;  %s2268_s27 = sphi %s2389_s27, %s2759_s27   ;;  %s2264_s26 = sphi %s2387_s26, %s2758_s26   ;;  %s2260_s25 = sphi %s2385_s25, %s2762_s25   ;;  %s2256_s24 = sphi %s2383_s24, %s2761_s24  }
   0xd   : > { %2739 = sst [smem:[#allocation19_spill]] %s2264_s26  ;;  %s1734_s30 = sadd.s32 4294967294, %s2276_s29  }
   0xe   : > { %2740 = sst [smem:[#allocation20_spill]] %s2272_s28  ;;  %s45_s18 = sadd.s32 1, %s2272_s28 }
   0xf   : > { %2741 = sst [smem:[#allocation21_spill]] %s2276_s29  ;;  %s416_s19 = sadd.s32 1, %s2264_s26 }
  0x10   : > { %p47_p0 = scmp.ge.s32.totalorder %s45_s18, 2  ;;  %p426_p1 = scmp.ne.s32.totalorder %s2264_s26, %s2260_s25 }
  0x11   : > { %p427_p2 = scmp.eq.s32.totalorder %s1733_s0, 1  ;;  %p432_p3 = scmp.ne.s32.totalorder %s2260_s25, %s2256_s24 }
  0x12   : > { %s2764_s18 = smov (%p47_p0, %s45_s18), 0  ;;  %p433_p5 = scmp.eq.s32.totalorder %s1734_s30, 1 }
  0x13   : > { %2742 = sst [smem:[#allocation22_spill]] %s2764_s18  ;;  %p2423_p4 = por %p427_p2, %p426_p1 }
  0x14   : > { %s411_s20 = ssub.s32 %s2272_s28, %s2764_s18  ;;  %p1735_p6 = scmp.ge.s32.totalorder %s2276_s29, 1 }
  0x15   : > { %p414_p7 = scmp.eq.s32.totalorder %s411_s20, 0  ;;  %p2430_p8 = por %p433_p5, %p432_p3 }
  0x16   : > { %p440_p9 = scmp.lt.s32.totalorder %s2276_s29, 3  ;;  %p2442_p11 = scmp.eq.s32.totalorder %s1733_s0, 0 }
  0x17   : > { %s2744_s21 = scalar_select %p2430_p8, 1, 0 }
  0x18   : > { %s2436_s22 = scalar_select %p414_p7, %s2264_s26, %s416_s19  }
  0x19   : > { %2745 = sst [smem:[#allocation23_spill]] %s2744_s21  ;;  %p2438_p10 = pnand %p1735_p6, %p440_p9 }
  0x1a   : > { %2746 = sst [smem:[#allocation24_spill]] %s2436_s22  ;;  %s2278_s30 = smov [#allocation8]  }
  0x1b   : > { %p1956_p12 = pneg %p2438_p10  ;;  %s480_s20 = sshll.u32 %s2278_s30, 4  ;;  %s481_s20 = int_to_ptr.vmem [resolvable:$true] %s480_s20 }
  0x1c   : > { %s2279_s19 = smov [#allocation5]   ;;  %s2095_s0 = scalar_lea.vmem %s481_s20, 256 }
  0x1d   : > { %p2450_p13 = pnand %p2442_p11, %p1956_p12  ;;  %s464_s28 = sshll.u32 %s2279_s19, 4  ;;  %s465_s28 = int_to_ptr.vmem [resolvable:$true] %s464_s28 }
  0x1e   : > { %p2096_p1 = scmp.ne.s32.totalorder %s481_s20, %s2095_s0  ;;  %p2103_p5 = scmp.lt.s32.totalorder %s481_s20, %s481_s20 }
  0x1f   : > { %p2086_p0 = pneg %p2450_p13  ;;  %p2104_p6 = scmp.lt.s32.totalorder %s2095_s0, %s2095_s0 }
  0x21   : > { %p2098_p2 = pnand %p2096_p1, %p2086_p0  ;;  %p2105_p7 = por %p2104_p6, %p2103_p5 }
  0x23   : > { %p2099_p3 = pneg %p2098_p2 }
  0x25   : > { %p2106_p9 = pnand %p2105_p7, %p2099_p3 }
  0x27   : > { %2109 = shalt.err (!%p2106_p9)
}
  0x28   : > { %s2280_s30 = smov 64   ;;  %s2281_s22 = smov 4  }
  0x29   : > { %s2750_s7 = sld [smem:[#allocation27_spill]]  ;;  %s2121_s21 = scalar_lea.vmem %s465_s28, 256 }
  0x2a   : > { %p2122_p12 = scmp.ne.s32.totalorder %s465_s28, %s2121_s21  ;;  %p2129_p3 = scmp.lt.s32.totalorder %s465_s28, %s465_s28 }
  0x2b   : > { %p2130_p5 = scmp.lt.s32.totalorder %s2121_s21, %s2121_s21 }
  0x2c   : > { %p2124_p1 = pnand %p2122_p12, %p2086_p0 }
  0x2d   : > { %p2131_p6 = por %p2130_p5, %p2129_p3 }
  0x2e   : > { %p2125_p2 = pneg %p2124_p1 }
  0x2f   : > { %1962 = dma.hbm_to_vmem [thread:$0]  (!%p2450_p13), %s2750_s7, 256, %s481_s20, [#allocation9], %s2280_s30, %s2280_s30, %s2281_s22  }
  0x30   : > { %p2132_p7 = pnand %p2131_p6, %p2125_p2 }
  0x32   : > { %2135 = shalt.err (!%p2132_p7)
}
  0x33   : > { %1959 = dma.hbm_to_vmem [thread:$0]  (!%p2450_p13), %s2711_s5, 256, %s465_s28, [#allocation6], %s2280_s30, %s2280_s30, %s2281_s22  }
  0x34   : > { %s2282_s20 = smov [#allocation10]   ;;  %s2283_s7 = smov [#allocation11]  }
  0x35   : > { %s496_s19 = sshll.u32 %s2282_s20, 4  ;;  %s510_s29 = sshll.u32 %s2283_s7, 4  ;;  %s497_s19 = int_to_ptr.vmem [resolvable:$true] %s496_s19  ;;  %s511_s29 = int_to_ptr.vmem [resolvable:$true] %s510_s29 }
  0x36   : > { %s2147_s17 = scalar_lea.vmem %s497_s19, 256  ;;  %p2155_p2 = scmp.lt.s32.totalorder %s497_s19, %s497_s19 }
  0x37   : > { %p2148_p9 = scmp.ne.s32.totalorder %s497_s19, %s2147_s17  ;;  %p2156_p3 = scmp.lt.s32.totalorder %s2147_s17, %s2147_s17 }
  0x39   : > { %p2150_p12 = pnand %p2148_p9, %p2086_p0  ;;  %p2157_p5 = por %p2156_p3, %p2155_p2 }
  0x3b   : > { %p2151_p1 = pneg %p2150_p12 }
  0x3d   : > { %p2158_p6 = pnand %p2157_p5, %p2151_p1 }
  0x3f   : > { %2161 = shalt.err (!%p2158_p6)
}
  0x40   : > { %1965 = dma.hbm_to_vmem [thread:$0]  (!%p2450_p13), %s2715_s9, 256, %s497_s19, [#allocation9], %s2280_s30, %s2280_s30, %s2281_s22  }
  0x41   : > { %s2173_s7 = scalar_lea.vmem %s511_s29, 16  ;;  %s2180_s17 = scalar_lea.vmem %s511_s29, 32 }
  0x42   : > { %p2174_p7 = scmp.ne.s32.totalorder %s511_s29, %s2173_s7  ;;  %p2181_p1 = scmp.lt.s32.totalorder %s511_s29, %s511_s29 }
  0x43   : > { %p2182_p2 = scmp.lt.s32.totalorder %s2180_s17, %s2173_s7 }
  0x44   : > { %p2176_p9 = pnand %p2174_p7, %p2086_p0 }
  0x45   : > { %p2183_p3 = por %p2182_p2, %p2181_p1 }
  0x46   : > { %p2177_p12 = pneg %p2176_p9 }
  0x48   : > { %p2184_p5 = pnand %p2183_p3, %p2177_p12 }
  0x4a   : > { %2187 = shalt.err (!%p2184_p5)
}
  0x4b   : > { %1968 = dma.hbm_to_vmem [thread:$0]  (!%p2450_p13), %s2716_s10, 16, %s511_s29, [#allocation12]  }
  0x4c   : > { %548 = sbr.rel (%p2438_p10) target bundleno = 2211 (0x8a3), region = 88 }
  0x51   : > { %2239 = dma.done.wait (%p2442_p11), [#allocation6], 256  }
  0x52   : > { %2241 = vsyncadd (%p2442_p11), [#allocation6], 4294967040 }
  0x53   : > { %2243 = dma.done.wait (%p2442_p11), [#allocation9], 512  }
  0x54   : > { %2245 = vsyncadd (%p2442_p11), [#allocation9], 4294966784 }
  0x55   : > { %2247 = dma.done.wait (%p2442_p11), [#allocation12], 16  }
  0x56   : > { %2249 = vsyncadd (%p2442_p11), [#allocation12], 4294967280  ;;  %p611_p10 = scmp.lt.s32.totalorder %s2268_s27, 1  ;;  %v2284_v0 = vmov 0.0   ;;  %vm2285_vm0 = vmmov 0   ;;  %s2751_s23 = sld [smem:[#allocation25_spill]] }
  0x57   : > { %1838 = vmatprep.subr.bf16.mxu0 %v2284_v0  ;;  %1842 = vmatprep.mubr.msk.bf16.mxu0 %vm2285_vm0, %v2284_v0  ;;  %v2044_v1 = vld [vmem:[%s2709_s3 + $0x8] sm:$0xff]   ;;  %v2045_v2 = vld [vmem:[%s2709_s3] sm:$0xff]   ;;  %vm645_vm1 = vcmask 261120   ;;  %s2752_s0 = sld [smem:[#allocation26_spill]]  ;;  %v2048_v7 = vld [vmem:[#allocation5 + $0x8] sm:$0xff]   ;;  %vm690_vm2 = vcmask 257024  }
  0x58   : > { %s612_s29 = scalar_select %p611_p10, %s2268_s27, 1  ;;  %1846 = vmatprep.subr.bf16.mxu1 %v2284_v0  ;;  %1850 = vmatprep.mubr.msk.bf16.mxu1 %vm2285_vm0, %v2284_v0  ;;  %v2049_v8 = vld [vmem:[#allocation5] sm:$0xff]   ;;  %v1748_v9 = vld [vmem:[%s2710_s4] ss:$0 sm:$0xff]  ;;  %vm830_vm3 = vcmask 64512   ;;  %vm893_vm4 = vcmask 1043456  }
  0x59   : > { %1839 = vmatpush3.bf16.msra.mxu0 %v2044_v1  ;;  %1847 = vmatpush3.bf16.msra.mxu1 %v2048_v7  ;;  %v1756_v16 = vld [vmem:[%s2708_s2] ss:$0 sm:$0xff]  ;;  %s2287_s20 = smov 120   ;;  %s2288_s19 = smov 104   ;;  %vm938_vm5 = vcmask 60416   ;;  %vm1066_vm6 = vcmask 126016  }
  0x5a   : > { %s1747_s18 = sshll.u32 %s612_s29, 3  ;;  %1840 = vmatprep.subr.bf16.mxu0 %v2284_v0  ;;  %1848 = vmatprep.subr.bf16.mxu1 %v2284_v0  ;;  %v1752_v28 = vld [vmem:[%s2712_s6] ss:$0 sm:$0xff]  ;;  %s2289_s7 = smov 8   ;;  %vm1193_vm7 = vcmask 191616   ;;  %vm1320_vm8 = vcmask 257216  }
  0x5b   : > { %s2290_s17 = smov 16   ;;  %s2291_s26 = smov 24   ;;  %vm1530_vm9 = vcmask 523264  }
  0x5c   : > { %s614_s30 = scalar_lea.vmem %s2751_s23, %s1747_s18  ;;  %s608_s24 = sand.u32 1, %s2260_s25  }
  0x5d   : > { %v2528_v3 = vld [vmem:[%s614_s30] sm:$0xff]  ;;  %v2046_v4 = vld [vmem:[%s2752_s0 + $0x8] sm:$0xff]   ;;  %1841 = vmatpush3.bf16.msra.mxu0 %v2045_v2  ;;  %1849 = vmatpush3.bf16.msra.mxu1 %v2049_v8  ;;  %s2286_s30 = smov 112   ;;  %s1746_s23 = sshll.u32 %s608_s24, 3 }
  0x5e   : > { %v621_v5 = vpack.c.bf16 %v2528_v3, %v2528_v3  ;;  %1854 = vmatprep.subr.bf16.mxu0 %v2284_v0  ;;  %v2047_v6 = vld [vmem:[%s2752_s0] sm:$0xff]   ;;  %1862 = vmatprep.subr.bf16.mxu1 %v2284_v0  ;;  %s1796_s21 = sshll.u32 %s2268_s27, 7  ;;  %s2753_s18 = sld [smem:[#allocation28_spill]] }
  0x5f   : > { %s1608_s0 = scalar_lea.sflag [#allocation7], %s608_s24 }
  0x60   : > { %1843 = vmatmul.mubr.msk.bf16.vlgmr.msra.gmra.mxu0 %vm645_vm1, %v621_v5  ;;  %1851 = vmatmul.mubr.msk.bf16.vlgmr.msra.gmra.mxu1 %vm645_vm1, %v621_v5 }
  0x61   : > { %1855 = vmatpush3.bf16.msra.mxu0 %v2046_v4  ;;  %1858 = vmatprep.mubr.msk.bf16.mxu0 %vm2285_vm0, %v2284_v0 }
  0x62   : > { %1856 = vmatprep.subr.bf16.mxu0 %v2284_v0  ;;  %1864 = vmatprep.mubr.msk.bf16.mxu1 %vm2285_vm0, %v2284_v0 }
  0x64   : > { %s1620_s22 = scalar_lea.hbm %s2753_s18, %s1796_s21 }
  0x65   : > { %1857 = vmatpush3.bf16.msra.mxu0 %v2047_v6 }
  0x66   : > { %1868 = vmatprep.subr.bf16.mxu0 %v2284_v0 }
  0x68   : > { %1859 = vmatmul.mubr.msk.bf16.vlgmr.msra.gmra.mxu0 %vm645_vm1, %v621_v5 }
  0x69   : > { %1870 = vmatprep.mubr.msk.bf16.mxu0 %vm2285_vm0, %v2284_v0 }
 0x120   : > { %v683_v10 = vpop.f32.mrf.mxu0  ;;  %v749_v29 = vpop.f32.mrf.mxu1 }
 0x121   : > { %v684_v11 = vadd.f32 %v1748_v9, %v683_v10  ;;  %v750_v30 = vadd.f32 %v1752_v28, %v749_v29 }
 0x122   : > { %v1844_v12 = vpop.f32.mrf.mxu0  ;;  %v1852_v31 = vpop.f32.mrf.mxu1 }
 0x123   : > { %v689_v13 = vpack.c.bf16 %v684_v11, %v684_v11  ;;  %v755_v32 = vpack.c.bf16 %v750_v30, %v750_v30 }
 0x124   : > { %v686_v14 = vpop.f32.mrf.mxu0  ;;  %v752_v33 = vpop.f32.mrf.mxu1 }
 0x125   : > { %691 = vst.msk [vmem:[#allocation2] sm:$0xf] %vm690_vm2, %v689_v13  ;;  %756 = vst.msk [vmem:[#allocation3] sm:$0xf] %vm690_vm2, %v755_v32 }
 0x126   : > { %v1845_v15 = vpop.f32.mrf.mxu0  ;;  %v1853_v34 = vpop.f32.mrf.mxu1 }
 0x128   : > { %v822_v17 = vpop.f32.mrf.mxu0 }
 0x129   : > { %v823_v18 = vadd.f32 %v1756_v16, %v822_v17 }
 0x12a   : > { %v1860_v19 = vpop.f32.mrf.mxu0 }
 0x12b   : > { %v828_v25 = vpack.c.bf16 %v823_v18, %v823_v18 }
 0x12c   : > { %v829_v20 = vld [vmem:[#allocation2] sm:$0xf]  ;;  %v825_v22 = vpop.f32.mrf.mxu0  ;;  %v889_v35 = vld [vmem:[#allocation3] sm:$0xf] }
 0x12d   : > { %v2050_v21 = vld [vmem:[#allocation2] ss:$0 sps:$4 sm:$0xff]   ;;  %v835_v23 = vsel %vm830_vm3, %v829_v20, 0  ;;  %v895_v36 = vsel %vm893_vm4, %v889_v35, 0  ;;  %v2053_v9 = vld [vmem:[#allocation3] ss:$0 sps:$4 sm:$0xff]  }
 0x12e   : > { %v2051_v24 = vld [vmem:[#allocation2] ss:$0 sps:$4 sm:$0xff]   ;;  %1863 = vmatpush3.bf16.xpose.msra.mxu1 %v835_v23  ;;  %1074 = vrot.lane.b32.xlu1 %v2050_v21, %s2286_s30  ;;  %v1861_v26 = vpop.f32.mrf.mxu0  ;;  %v2055_v30 = vld [vmem:[#allocation3] ss:$0 sps:$4 sm:$0xff]  }
 0x12f   : > { %947 = vrot.lane.b32.xlu0 %v2051_v24, %s2287_s20  ;;  %1874 = vmatprep.subr.bf16.mxu1 %v2284_v0  ;;  %v2052_v27 = vld [vmem:[#allocation2] ss:$0 sps:$4 sm:$0xff]   ;;  %v2054_v26 = vld [vmem:[#allocation3] ss:$0 sps:$4 sm:$0xff]  }
 0x130   : > { %1869 = vmatpush3.bf16.msra.mxu0 %v895_v36 }
 0x131   : > { %1880 = vmatprep.subr.bf16.mxu0 %v2284_v0 }
 0x132   : > { %1069 = vrot.lane.b32.xlu1 %v828_v25, %s2286_s30 }
 0x133   : > { %942 = vrot.lane.b32.xlu0 %v828_v25, %s2287_s20 }
 0x135   : > { %1865 = vmatmul.mubr.msk.bf16.vlgmr.msra.gmra.mxu1 %vm830_vm3, %v828_v25 }
 0x136   : > { %1196 = vrot.lane.b32.xlu1 %v828_v25, %s2288_s19  ;;  %1876 = vmatprep.mubr.msk.bf16.mxu1 %vm2285_vm0, %v2284_v0 }
 0x137   : > { %1201 = vrot.lane.b32.xlu0 %v2052_v27, %s2288_s19 }
 0x1a0   : > { %v1075_v39 = vpop.permute.xlu1 %1074 }
 0x1a1   : > { %v948_v37 = vpop.permute.xlu0 %947  ;;  %v1080_v41 = vsel %vm830_vm3, %v1075_v39, 0 }
 0x1a2   : > { %v953_v38 = vsel %vm830_vm3, %v948_v37, 0 }
 0x1a3   : > { %1875 = vmatpush3.bf16.xpose.msra.mxu1 %v953_v38 }
 0x1a4   : > { %1886 = vmatprep.subr.bf16.mxu1 %v2284_v0  ;;  %v1070_v43 = vpop.permute.xlu1 %1069 }
 0x1a5   : > { %v943_v40 = vpop.permute.xlu0 %942 }
 0x1a8   : > { %v1197_v45 = vpop.permute.xlu1 %1196 }
 0x1a9   : > { %v1202_v42 = vpop.permute.xlu0 %1201 }
 0x1aa   : > { %1877 = vmatmul.mubr.msk.bf16.vlgmr.msra.gmra.mxu1 %vm830_vm3, %v943_v40  ;;  %v1207_v44 = vsel %vm830_vm3, %v1202_v42, 0 }
 0x1ab   : > { %1887 = vmatpush3.bf16.xpose.msra.mxu1 %v1080_v41  ;;  %1888 = vmatprep.mubr.msk.bf16.mxu1 %vm2285_vm0, %v2284_v0 }
 0x1ac   : > { %1898 = vmatprep.subr.bf16.mxu1 %v2284_v0 }
 0x1b2   : > { %1889 = vmatmul.mubr.msk.bf16.vlgmr.msra.gmra.mxu1 %vm830_vm3, %v1070_v43 }
 0x1b3   : > { %1899 = vmatpush3.bf16.xpose.msra.mxu1 %v1207_v44  ;;  %1900 = vmatprep.mubr.msk.bf16.mxu1 %vm2285_vm0, %v2284_v0 }
 0x1b4   : > { %1910 = vmatprep.subr.bf16.mxu1 %v2284_v0 }
 0x1ba   : > { %1901 = vmatmul.mubr.msk.bf16.vlgmr.msra.gmra.mxu1 %vm830_vm3, %v1197_v45 }
 0x1bb   : > { %1914 = vmatprep.mubr.msk.bf16.mxu1 %vm2285_vm0, %v2284_v0 }
 0x1f5   : > { %v871_v46 = vpop.f32.mrf.mxu1 }
 0x1f6   : > { %v877_v47 = vsel %vm830_vm3, %v871_v46, -inf }
 0x1f7   : > { %878 = vmax.xlane.f32.xlu0 %v877_v47  ;;  %v1866_v48 = vpop.f32.mrf.mxu1 }
 0x1f9   : > { %v874_v49 = vpop.f32.mrf.mxu1 }
 0x1fb   : > { %v1867_v50 = vpop.f32.mrf.mxu1 }
 0x26a   : > { %v989_v51 = vpop.f32.mrf.mxu1 }
 0x26b   : > { %v995_v52 = vsel %vm830_vm3, %v989_v51, -inf }
 0x26c   : > { %996 = vmax.xlane.f32.xlu1 %v995_v52  ;;  %v1878_v53 = vpop.f32.mrf.mxu1 }
 0x26e   : > { %v992_v54 = vpop.f32.mrf.mxu1 }
 0x270   : > { %v1879_v55 = vpop.f32.mrf.mxu1 }
 0x272   : > { %v1116_v56 = vpop.f32.mrf.mxu1 }
 0x273   : > { %v1122_v57 = vsel %vm830_vm3, %v1116_v56, -inf }
 0x274   : > { %1123 = vmax.xlane.f32.xlu0 %v1122_v57  ;;  %v1890_v58 = vpop.f32.mrf.mxu1 }
 0x276   : > { %v1119_v59 = vpop.f32.mrf.mxu1 }
 0x277   : > { %v2056_v59 = vld [vmem:[#allocation8 + $0x8] sm:$0xff]  }
 0x278   : > { %v1891_v60 = vpop.f32.mrf.mxu1  ;;  %1911 = vmatpush3.bf16.msra.mxu1 %v2056_v59 }
 0x279   : > { %1912 = vmatprep.subr.bf16.mxu1 %v2284_v0 }
 0x27a   : > { %v1243_v61 = vpop.f32.mrf.mxu1 }
 0x27b   : > { %v1249_v62 = vsel %vm830_vm3, %v1243_v61, -inf }
 0x27c   : > { %1250 = vmax.xlane.f32.xlu0 %v1249_v62  ;;  %v1902_v63 = vpop.f32.mrf.mxu1 }
 0x27e   : > { %v1246_v1 = vpop.f32.mrf.mxu1 }
 0x280   : > { %v879_v2 = vpop.xlane.xlu0 %878  ;;  %v1903_v4 = vpop.f32.mrf.mxu1 }
 0x281   : > { %v880_v5 = vsub.f32 %v871_v46, %v879_v2 }
 0x283   : > { %v881_v6 = vmul.f32 1.442695, %v880_v5 }
 0x285   : > { %2064 = vpow2.f32 %v881_v6 }
 0x292   : > { %v2065_v7 = vpop.eup %2064 }
 0x293   : > { %v883_v8 = vsel %vm830_vm3, %v2065_v7, 0.0 }
 0x294   : > { %884 = vadd.xlane.f32.xlu1 %v883_v8 }
 0x2a5   : > { %1011 = vrot.lane.b32.xlu1 %v2053_v9, %s2287_s20  ;;  %s2292_s20 = smov [#allocation13]  }
 0x2f5   : > { %v997_v10 = vpop.xlane.xlu1 %996 }
 0x2f6   : > { %v998_v11 = vsub.f32 %v989_v51, %v997_v10 }
 0x2f8   : > { %v999_v12 = vmul.f32 1.442695, %v998_v11 }
 0x2fa   : > { %2066 = vpow2.f32 %v999_v12 }
 0x2fd   : > { %v1124_v13 = vpop.xlane.xlu0 %1123 }
 0x2fe   : > { %v1125_v14 = vsub.f32 %v1116_v56, %v1124_v13  ;;  %v1777_v13 = vld [vmem:[%s2714_s8] ss:$0 sm:$0xff] }
 0x300   : > { %v1126_v15 = vmul.f32 1.442695, %v1125_v14 }
 0x302   : > { %2068 = vpow2.f32 %v1126_v15 }
 0x305   : > { %v1251_v16 = vpop.xlane.xlu0 %1250 }
 0x306   : > { %v1252_v17 = vsub.f32 %v1243_v61, %v1251_v16  ;;  %v2057_v61 = vld [vmem:[#allocation8] sm:$0xff]  }
 0x307   : > { %v2067_v18 = vpop.eup %2066  ;;  %1913 = vmatpush3.bf16.msra.mxu1 %v2057_v61 }
 0x308   : > { %v1253_v19 = vmul.f32 1.442695, %v1252_v17  ;;  %v1001_v20 = vsel %vm830_vm3, %v2067_v18, 0.0  ;;  %1926 = vmatprep.subr.bf16.mxu1 %v2284_v0 }
 0x309   : > { %1002 = vadd.xlane.f32.xlu0 %v1001_v20 }
 0x30a   : > { %2070 = vpow2.f32 %v1253_v19 }
 0x30f   : > { %v2069_v21 = vpop.eup %2068 }
 0x310   : > { %v1128_v22 = vsel %vm830_vm3, %v2069_v21, 0.0 }
 0x311   : > { %1129 = vadd.xlane.f32.xlu1 %v1128_v22 }
 0x317   : > { %v2071_v23 = vpop.eup %2070 }
 0x318   : > { %v1255_v24 = vsel %vm830_vm3, %v2071_v23, 0.0 }
 0x319   : > { %1256 = vadd.xlane.f32.xlu0 %v1255_v24  ;;  %v2059_v24 = vld [vmem:[#allocation10] sm:$0xff]  }
 0x31d   : > { %v885_v25 = vpop.xlane.xlu1 %884 }
 0x31e   : > { %2072 = vrcp.f32 %v885_v25  ;;  %v2060_v25 = vld [vmem:[%s2717_s11 + $0x18] sm:$0xff]  }
 0x321   : > { %v1012_v29 = vpop.permute.xlu1 %1011 }
 0x322   : > { %1265 = vrot.lane.b32.xlu1 %v2054_v26, %s2288_s19  ;;  %v1017_v32 = vsel %vm893_vm4, %v1012_v29, 0  ;;  %s2192_s19 = sshll.u32 %s2292_s20, 4  ;;  %s2193_s19 = int_to_ptr.vmem [resolvable:$false] %s2192_s19 }
 0x323   : > { %s2194_s27 = scalar_lea.vmem %s2193_s19, 256 }
 0x32b   : > { %v2073_v27 = vpop.eup %2072 }
 0x32c   : > { %v887_v28 = vmul.f32 %v2073_v27, %v2065_v7 }
 0x32e   : > { %v888_v31 = vpack.c.bf16 %v887_v28, %v887_v28 }
 0x32f   : > { %1138 = vrot.lane.b32.xlu0 %v2055_v30, %s2286_s30 }
 0x330   : > { %1871 = vmatmul.mubr.msk.bf16.vlgmr.msra.gmra.mxu0 %vm830_vm3, %v888_v31 }
 0x331   : > { %1881 = vmatpush3.bf16.msra.mxu0 %v1017_v32  ;;  %1882 = vmatprep.mubr.msk.bf16.mxu0 %vm2285_vm0, %v2284_v0 }
 0x332   : > { %1892 = vmatprep.subr.bf16.mxu0 %v2284_v0 }
 0x392   : > { %v1003_v33 = vpop.xlane.xlu0 %1002 }
 0x393   : > { %2074 = vrcp.f32 %v1003_v33 }
 0x39a   : > { %v1130_v34 = vpop.xlane.xlu1 %1129 }
 0x39b   : > { %2076 = vrcp.f32 %v1130_v34 }
 0x39e   : > { %v1266_v43 = vpop.permute.xlu1 %1265 }
 0x39f   : > { %v1271_v45 = vsel %vm893_vm4, %v1266_v43, 0  ;;  %v1783_v43 = vld [vmem:[#allocation11] ss:$0 sm:$0xff] }
 0x3a0   : > { %v2075_v35 = vpop.eup %2074 }
 0x3a1   : > { %v1005_v36 = vmul.f32 %v2075_v35, %v2067_v18  ;;  %v1781_v35 = vld [vmem:[%s2719_s13] ss:$0 sm:$0xff] }
 0x3a2   : > { %v1257_v37 = vpop.xlane.xlu0 %1256 }
 0x3a3   : > { %2078 = vrcp.f32 %v1257_v37  ;;  %v1006_v38 = vpack.c.bf16 %v1005_v36, %v1005_v36  ;;  %v1782_v37 = vld [vmem:[%s2720_s14] ss:$0 sm:$0xff] }
 0x3a5   : > { %1883 = vmatmul.mubr.msk.bf16.vlgmr.msra.gmra.mxu0 %vm830_vm3, %v1006_v38 }
 0x3a6   : > { %v1139_v39 = vpop.permute.xlu0 %1138  ;;  %1894 = vmatprep.mubr.msk.bf16.mxu0 %vm2285_vm0, %v2284_v0 }
 0x3a7   : > { %v1144_v40 = vsel %vm893_vm4, %v1139_v39, 0 }
 0x3a8   : > { %v2077_v41 = vpop.eup %2076  ;;  %1893 = vmatpush3.bf16.msra.mxu0 %v1144_v40 }
 0x3a9   : > { %1904 = vmatprep.subr.bf16.mxu0 %v2284_v0  ;;  %v1132_v42 = vmul.f32 %v2077_v41, %v2069_v21  ;;  %v2062_v41 = vld [vmem:[%s2717_s11 + $0x8] sm:$0xff]  }
 0x3ab   : > { %v1133_v44 = vpack.c.bf16 %v1132_v42, %v1132_v42  ;;  %v2063_v42 = vld [vmem:[%s2717_s11] sm:$0xff]  }
 0x3ad   : > { %1895 = vmatmul.mubr.msk.bf16.vlgmr.msra.gmra.mxu0 %vm830_vm3, %v1133_v44 }
 0x3ae   : > { %1905 = vmatpush3.bf16.msra.mxu0 %v1271_v45  ;;  %1906 = vmatprep.mubr.msk.bf16.mxu0 %vm2285_vm0, %v2284_v0 }
 0x3af   : > { %1918 = vmatprep.subr.bf16.mxu0 %v2284_v0 }
 0x3b0   : > { %v2079_v46 = vpop.eup %2078 }
 0x3b1   : > { %v1259_v47 = vmul.f32 %v2079_v46, %v2071_v23  ;;  %v2058_v23 = vld [vmem:[#allocation10 + $0x8] sm:$0xff]  }
 0x3b3   : > { %v1260_v48 = vpack.c.bf16 %v1259_v47, %v1259_v47 }
 0x3b5   : > { %1907 = vmatmul.mubr.msk.bf16.vlgmr.msra.gmra.mxu0 %vm830_vm3, %v1260_v48 }
 0x3b6   : > { %1922 = vmatprep.mubr.msk.bf16.mxu0 %vm2285_vm0, %v2284_v0  ;;  %1919 = vmatpush3.bf16.msra.mxu0 %v2058_v23 }
 0x3b7   : > { %1920 = vmatprep.subr.bf16.mxu0 %v2284_v0 }
 0x3ba   : > { %1921 = vmatpush3.bf16.msra.mxu0 %v2059_v24 }
 0x3f0   : > { %v931_v49 = vpop.f32.mrf.mxu0 }
 0x3f1   : > { %v937_v50 = vpack.c.bf16 %v931_v49, %v931_v49 }
 0x3f2   : > { %v1872_v51 = vpop.f32.mrf.mxu0 }
 0x3f3   : > { %939 = vst.msk [vmem:[#allocation4] sm:$0xf] %vm938_vm5, %v937_v50  ;;  %v1787_v51 = vld [vmem:[%s2718_s12] ss:$0 sm:$0xff] }
 0x3f4   : > { %v934_v52 = vpop.f32.mrf.mxu0 }
 0x3f6   : > { %v1873_v53 = vpop.f32.mrf.mxu0 }
 0x465   : > { %v1053_v54 = vpop.f32.mrf.mxu0 }
 0x466   : > { %v1799_v55 = vpack.c.bf16 %v1053_v54, %v1053_v54 }
 0x467   : > { %v1884_v56 = vpop.f32.mrf.mxu0 }
 0x468   : > { %1063 = vrot.lane.b32.xlu1 %v1799_v55, %s2289_s7  ;;  %s610_s7 = scalar_lea.vmem [#allocation13], %s1746_s23 }
 0x469   : > { %v1056_v57 = vpop.f32.mrf.mxu0 }
 0x46b   : > { %v1885_v58 = vpop.f32.mrf.mxu0 }
 0x46d   : > { %v1180_v60 = vpop.f32.mrf.mxu0 }
 0x46e   : > { %v1800_v62 = vpack.c.bf16 %v1180_v60, %v1180_v60 }
 0x46f   : > { %v1896_v63 = vpop.f32.mrf.mxu0 }
 0x470   : > { %1190 = vrot.lane.b32.xlu0 %v1800_v62, %s2290_s17  ;;  %s1622_s17 = sshll.u32 %s610_s7, 4  ;;  %s1623_s17 = int_to_ptr.vmem [resolvable:$true] %s1622_s17 }
 0x471   : > { %v1183_v1 = vpop.f32.mrf.mxu0  ;;  %s2188_s30 = scalar_lea.vmem %s1623_s17, 128  ;;  %p2195_p6 = scmp.lt.s32.totalorder %s1623_s17, %s2193_s19 }
 0x472   : > { %p2189_p11 = scmp.ne.s32.totalorder %s1623_s17, %s2188_s30  ;;  %p2196_p7 = scmp.lt.s32.totalorder %s2194_s27, %s2188_s30 }
 0x473   : > { %v1897_v2 = vpop.f32.mrf.mxu0 }
 0x474   : > { %p2190_p13 = pnand %p2189_p11, %p2423_p4  ;;  %p2197_p9 = por %p2196_p7, %p2195_p6 }
 0x475   : > { %v1307_v4 = vpop.f32.mrf.mxu0 }
 0x476   : > { %v1801_v5 = vpack.c.bf16 %v1307_v4, %v1307_v4  ;;  %p2191_p0 = pneg %p2190_p13 }
 0x477   : > { %v1908_v6 = vpop.f32.mrf.mxu0 }
 0x478   : > { %1317 = vrot.lane.b32.xlu1 %v1801_v5, %s2291_s26  ;;  %p2198_p12 = pnand %p2197_p9, %p2191_p0 }
 0x479   : > { %v1310_v7 = vpop.f32.mrf.mxu0 }
 0x47a   : > { %v1793_v7 = vld [vmem:[%s2721_s15] ss:$0 sm:$0xff] }
 0x47b   : > { %v1909_v8 = vpop.f32.mrf.mxu0 }
 0x4da   : > { %v1064_v9 = vpop.permute.xlu1 %1063 }
 0x4db   : > { %1067 = vst.msk [vmem:[#allocation4] sm:$0xf] %vm1066_vm6, %v1064_v9  ;;  %v1794_v9 = vld [vmem:[%s2722_s16] ss:$0 sm:$0xff] }
 0x4e2   : > { %v1191_v10 = vpop.permute.xlu0 %1190 }
 0x4e3   : > { %1194 = vst.msk [vmem:[#allocation4] sm:$0xf] %vm1193_vm7, %v1191_v10 }
 0x4ea   : > { %v1318_v11 = vpop.permute.xlu1 %1317 }
 0x4eb   : > { %1321 = vst.msk [vmem:[#allocation4] sm:$0xf] %vm1320_vm8, %v1318_v11 }
 0x4f2   : > { %v1322_v12 = vld [vmem:[#allocation4] sm:$0xf] }
 0x4f3   : > { %1915 = vmatmul.mubr.msk.bf16.vlgmr.msra.gmra.mxu1 %vm645_vm1, %v1322_v12 }
 0x4f4   : > { %1934 = vmatprep.mubr.msk.bf16.mxu1 %vm2285_vm0, %v2284_v0  ;;  %1927 = vmatpush3.bf16.msra.mxu1 %v2060_v25 }
 0x4f5   : > { %1928 = vmatprep.subr.bf16.mxu1 %v2284_v0 }
 0x5b3   : > { %v1383_v14 = vpop.f32.mrf.mxu1 }
 0x5b4   : > { %v1384_v15 = vadd.f32 %v1777_v13, %v1383_v14 }
 0x5b5   : > { %v1916_v16 = vpop.f32.mrf.mxu1 }
 0x5b6   : > { %v1389_v17 = vadd.f32 %v1384_v15, %v2528_v3  ;;  %v2061_v3 = vld [vmem:[%s2717_s11 + $0x10] sm:$0xff]  }
 0x5b7   : > { %v1386_v18 = vpop.f32.mrf.mxu1  ;;  %1929 = vmatpush3.bf16.msra.mxu1 %v2061_v3 }
 0x5b8   : > { %v1392_v19 = vsel %vm645_vm1, %v1389_v17, 0.0  ;;  %v1397_v20 = vmul.f32 %v1389_v17, %v1389_v17  ;;  %1930 = vmatprep.subr.bf16.mxu1 %v2284_v0 }
 0x5b9   : > { %1393 = vadd.xlane.f32.xlu0 %v1392_v19  ;;  %v1917_v21 = vpop.f32.mrf.mxu1 }
 0x5ba   : > { %v1398_v22 = vsel %vm645_vm1, %v1397_v20, 0.0 }
 0x5bb   : > { %1399 = vadd.xlane.f32.xlu1 %v1398_v22  ;;  %1931 = vmatpush3.bf16.msra.mxu1 %v2062_v41 }
 0x5bc   : > { %1932 = vmatprep.subr.bf16.mxu1 %v2284_v0 }
 0x5bf   : > { %1933 = vmatpush3.bf16.msra.mxu1 %v2063_v42 }
 0x642   : > { %v1394_v26 = vpop.xlane.xlu0 %1393 }
 0x643   : > { %v1396_v27 = vmul.f32 0.03125, %v1394_v26 }
 0x644   : > { %v1400_v28 = vpop.xlane.xlu1 %1399 }
 0x645   : > { %v1402_v29 = vmul.f32 %v1396_v27, %v1396_v27  ;;  %v1401_v30 = vmul.f32 0.03125, %v1400_v28  ;;  %v1404_v33 = vsub.f32 %v1389_v17, %v1396_v27 }
 0x647   : > { %v1403_v31 = vsub.f32 %v1401_v30, %v1402_v29 }
 0x649   : > { %v1405_v32 = vadd.f32 1e-05, %v1403_v31 }
 0x64b   : > { %2080 = vrsqrt.f32 %v1405_v32 }
 0x658   : > { %v2081_v34 = vpop.eup %2080 }
 0x659   : > { %v1407_v36 = vmul.f32 %v2081_v34, %v1404_v33 }
 0x65b   : > { %v1414_v38 = vmul.f32 %v1781_v35, %v1407_v36 }
 0x65d   : > { %v1421_v39 = vadd.f32 %v1782_v37, %v1414_v38 }
 0x65f   : > { %v1422_v40 = vpack.c.bf16 %v1421_v39, %v1421_v39 }
 0x661   : > { %1923 = vmatmul.mubr.msk.bf16.vlgmr.msra.gmra.mxu0 %vm645_vm1, %v1422_v40 }
 0x721   : > { %v1483_v44 = vpop.f32.mrf.mxu0 }
 0x722   : > { %v1484_v45 = vadd.f32 %v1783_v43, %v1483_v44 }
 0x723   : > { %v1924_v46 = vpop.f32.mrf.mxu0 }
 0x724   : > { %v1489_v47 = vmax.f32 %v1484_v45, 0.0 }
 0x725   : > { %v1486_v48 = vpop.f32.mrf.mxu0 }
 0x726   : > { %v1490_v49 = vpack.c.bf16 %v1489_v47, %v1489_v47 }
 0x727   : > { %v1925_v50 = vpop.f32.mrf.mxu0 }
 0x728   : > { %1935 = vmatmul.mubr.msk.bf16.vlgmr.msra.gmra.mxu1 %vm1530_vm9, %v1490_v49 }
 0x7e8   : > { %v1568_v0 = vpop.f32.mrf.mxu1 }
 0x7e9   : > { %v1569_v52 = vadd.f32 %v1787_v51, %v1568_v0 }
 0x7ea   : > { %v1936_v53 = vpop.f32.mrf.mxu1 }
 0x7eb   : > { %v1574_v54 = vadd.f32 %v1569_v52, %v1421_v39 }
 0x7ec   : > { %v1571_v55 = vpop.f32.mrf.mxu1 }
 0x7ed   : > { %v1577_v56 = vsel %vm645_vm1, %v1574_v54, 0.0  ;;  %v1581_v57 = vmul.f32 %v1574_v54, %v1574_v54 }
 0x7ee   : > { %1578 = vadd.xlane.f32.xlu0 %v1577_v56  ;;  %v1937_v58 = vpop.f32.mrf.mxu1 }
 0x7ef   : > { %v1582_v59 = vsel %vm645_vm1, %v1581_v57, 0.0 }
 0x7f2   : > { %1583 = vadd.xlane.f32.xlu0 %v1582_v59 }
 0x877   : > { %v1579_v60 = vpop.xlane.xlu0 %1578 }
 0x878   : > { %v1580_v61 = vmul.f32 0.03125, %v1579_v60 }
 0x87a   : > { %v1586_v63 = vmul.f32 %v1580_v61, %v1580_v61  ;;  %v1588_v5 = vsub.f32 %v1574_v54, %v1580_v61 }
 0x87b   : > { %v1584_v62 = vpop.xlane.xlu0 %1583 }
 0x87c   : > { %v1585_v1 = vmul.f32 0.03125, %v1584_v62 }
 0x87e   : > { %v1587_v2 = vsub.f32 %v1585_v1, %v1586_v63 }
 0x880   : > { %v1589_v4 = vadd.f32 1e-05, %v1587_v2 }
 0x882   : > { %2082 = vrsqrt.f32 %v1589_v4 }
 0x88f   : > { %v2083_v6 = vpop.eup %2082 }
 0x890   : > { %v1591_v8 = vmul.f32 %v2083_v6, %v1588_v5 }
 0x892   : > { %v1598_v10 = vmul.f32 %v1793_v7, %v1591_v8 }
 0x894   : > { %v1605_v11 = vadd.f32 %v1794_v9, %v1598_v10 }
 0x896   : > { %1606 = vst.msk [vmem:[%s610_s7] sm:$0xff] %vm645_vm1, %v1605_v11 }
 0x897   : > { %2201 = shalt.err (!%p2198_p12)
}
 0x898   : > { %s2202_s23 = scalar_lea.hbm %s1620_s22, 128  ;;  %s2206_s21 = scalar_lea.hbm %s2753_s18, 256 }
 0x899   : > { %p2203_p1 = scmp.ne.s32.totalorder %s1620_s22, %s2202_s23  ;;  %p2207_p5 = scmp.lt.s32.totalorder %s1620_s22, %s2753_s18 }
 0x89a   : > { %p2208_p10 = scmp.lt.s32.totalorder %s2206_s21, %s2202_s23 }
 0x89b   : > { %p2204_p2 = pnand %p2203_p1, %p2423_p4 }
 0x89c   : > { %p2209_p11 = por %p2208_p10, %p2207_p5 }
 0x89d   : > { %p2205_p3 = pneg %p2204_p2 }
 0x89f   : > { %p2210_p13 = pnand %p2209_p11, %p2205_p3 }
 0x8a1   : > { %2213 = shalt.err (!%p2210_p13)
}
 0x8a2   : > { %1954 = dma.vmem_to_hbm [thread:$0]  (%p2423_p4), %s1623_s17, 128, %s1620_s22, %s1608_s0  }
 0x8a3 PF: > { %s2754_s29 = sld [smem:[#allocation21_spill]] }
 0x8a4   : > { %s2755_s30 = sld [smem:[#allocation18_spill]] }
 0x8a9   : > { %p1981_p0 = scmp.ge.s32.totalorder %s2754_s29, 2 }
 0x8aa   : > { %s1634_s19 = sand.u32 1, %s2755_s30  }
 0x8ab   : > { %p1970_p6 = pnand %p1981_p0, %p2430_p8  ;;  %s1635_s27 = scalar_lea.sflag [#allocation7], %s1634_s19 }
 0x8ad   : > { %p1971_p7 = pneg %p1970_p6 }
 0x8af   : > { %2251 = dma.done.wait (%p1971_p7), %s1635_s27, 128  }
 0x8b0   : > { %2253 = vsyncadd (%p1971_p7), %s1635_s27, 4294967168  ;;  %s33_s29 = sadd.s32 1, %s2754_s29   ;;  %s2757_s23 = sld [smem:[#allocation19_spill]] }
 0x8b1   : > { %p30_p9 = scmp.ge.s32.totalorder %s33_s29, 4   ;;  %s2758_s26 = sld [smem:[#allocation24_spill]] }
 0x8b2   : > { %s2759_s27 = sld [smem:[#allocation20_spill]]  ;;  %s2761_s24 = smov %s2260_s25 }
 0x8b3   : > { %s2760_s28 = sld [smem:[#allocation22_spill]]  ;;  %32 = sbr.rel (!%p30_p9) target bundleno = 12 (0xc), region = 145 }
 0x8b6   : > { %s2762_s25 = smov %s2757_s23 }
 0x8b8   :  { %1640 = vsyncpa [#allocation6], 1 }
 0x8b9   :  { %1642 = vsyncpa [#allocation6 + $0x1], 1 }
 0x8ba   :  { %1643 = vsyncpa [#allocation9], 1 }
 0x8bb   :  { %1644 = vsyncpa [#allocation12], 1 }
 0x8bc   :  { %1645 = vsyncpa [#allocation7], 1 }
 0x8bd   :  { %1647 = vsyncpa [#allocation7 + $0x1], 1 }

// kernel: tpu_custom_call.1
= control target key start
LH: loop header
LB: loop body
LE: loop exit
PB: predicated region body
PF: predicated region fallthrough
CT: control target
= control target key end

     0   :  { %s2706_s0 = inlined_call_operand.vmem [shape: f32[2,8,32], index: 0, kind: input, shape index: {}]   ;;  %s2707_s1 = inlined_call_operand.vmem [shape: bf16[32,32], index: 1, kind: input, shape index: {}]   ;;  %s2708_s2 = inlined_call_operand.vmem [shape: f32[1,32], index: 2, kind: input, shape index: {}]   ;;  %s2709_s3 = inlined_call_operand.vmem [shape: bf16[32,32], index: 3, kind: input, shape index: {}]   ;;  %s2710_s4 = inlined_call_operand.vmem [shape: f32[1,32], index: 4, kind: input, shape index: {}]   ;;  %s2711_s5 = inlined_call_operand.hbm [shape: bf16[32,32], index: 5, kind: input, shape index: {}]   ;;  %s2712_s6 = inlined_call_operand.vmem [shape: f32[1,32], index: 6, kind: input, shape index: {}]   ;;  %s2713_s7 = inlined_call_operand.hbm [shape: bf16[32,32], index: 7, kind: input, shape index: {}]   ;;  %s2714_s8 = inlined_call_operand.vmem [shape: f32[1,32], index: 8, kind: input, shape index: {}]   ;;  %s2715_s9 = inlined_call_operand.hbm [shape: bf16[32,64], index: 9, kind: input, shape index: {}]   ;;  %s2716_s10 = inlined_call_operand.hbm [shape: f32[1,64], index: 10, kind: input, shape index: {}]   ;;  %s2717_s11 = inlined_call_operand.vmem [shape: bf16[64,32], index: 11, kind: input, shape index: {}]   ;;  %s2718_s12 = inlined_call_operand.vmem [shape: f32[1,32], index: 12, kind: input, shape index: {}]   ;;  %s2719_s13 = inlined_call_operand.vmem [shape: f32[1,32], index: 13, kind: input, shape index: {}]   ;;  %s2720_s14 = inlined_call_operand.vmem [shape: f32[1,32], index: 14, kind: input, shape index: {}]   ;;  %s2721_s15 = inlined_call_operand.vmem [shape: f32[1,32], index: 15, kind: input, shape index: {}]   ;;  %s2722_s16 = inlined_call_operand.vmem [shape: f32[1,32], index: 16, kind: input, shape index: {}]   ;;  %s2723_s17 = inlined_call_operand.hbm [shape: f32[2,8,32], index: 17, kind: output, shape index: {}]  }
   0x1   :  { %2734 = sst [smem:[#allocation25_spill]] %s2706_s0 }
   0x2   :  { %2735 = sst [smem:[#allocation26_spill]] %s2707_s1 }
   0x3   :  { %2736 = sst [smem:[#allocation27_spill]] %s2713_s7 }
   0x4   :  { %2737 = sst [smem:[#allocation28_spill]] %s2723_s17 }
   0x5   :  { %22 = vsyncpa [#allocation6], 0 }
   0x6   :  { %23 = vsyncpa [#allocation9], 0 }
   0x7   :  { %24 = vsyncpa [#allocation12], 0 }
   0x8   :  { %25 = vsyncpa [#allocation7], 0 }
   0x9   :  { %27 = vsyncpa [#allocation7 + $0x1], 0  ;;  %s2383_s24 = smov 0   ;;  %s2385_s25 = smov 0  }
   0xa   :  { %s2387_s26 = smov 0   ;;  %s2389_s27 = smov 0  }
   0xb   :  { %s2391_s28 = smov 0   ;;  %s2393_s29 = smov 0  }
   0xc LB: > { %2738 = sst [smem:[#allocation18_spill]] %s2256_s24  ;;  %s1733_s0 = sadd.s32 4294967295, %s2276_s29   ;;  %s2276_s29 = sphi %s2393_s29, %s33_s29   ;;  %s2272_s28 = sphi %s2391_s28, %s2760_s28   ;;  %s2268_s27 = sphi %s2389_s27, %s2759_s27   ;;  %s2264_s26 = sphi %s2387_s26, %s2758_s26   ;;  %s2260_s25 = sphi %s2385_s25, %s2762_s25   ;;  %s2256_s24 = sphi %s2383_s24, %s2761_s24  }
   0xd   : > { %2739 = sst [smem:[#allocation19_spill]] %s2264_s26  ;;  %s1734_s30 = sadd.s32 4294967294, %s2276_s29  }
   0xe   : > { %2740 = sst [smem:[#allocation20_spill]] %s2272_s28  ;;  %s45_s18 = sadd.s32 1, %s2272_s28 }
   0xf   : > { %2741 = sst [smem:[#allocation21_spill]] %s2276_s29  ;;  %s416_s19 = sadd.s32 1, %s2264_s26 }
  0x10   : > { %p47_p0 = scmp.ge.s32.totalorder %s45_s18, 2  ;;  %p426_p1 = scmp.ne.s32.totalorder %s2264_s26, %s2260_s25 }
  0x11   : > { %p427_p2 = scmp.eq.s32.totalorder %s1733_s0, 1  ;;  %p432_p3 = scmp.ne.s32.totalorder %s2260_s25, %s2256_s24 }
  0x12   : > { %s2764_s18 = smov (%p47_p0, %s45_s18), 0  ;;  %p433_p5 = scmp.eq.s32.totalorder %s1734_s30, 1 }
  0x13   : > { %2742 = sst [smem:[#allocation22_spill]] %s2764_s18  ;;  %p2423_p4 = por %p427_p2, %p426_p1 }
  0x14   : > { %s411_s20 = ssub.s32 %s2272_s28, %s2764_s18  ;;  %p1735_p6 = scmp.ge.s32.totalorder %s2276_s29, 1 }
  0x15   : > { %p414_p7 = scmp.eq.s32.totalorder %s411_s20, 0  ;;  %p2430_p8 = por %p433_p5, %p432_p3 }
  0x16   : > { %p440_p9 = scmp.lt.s32.totalorder %s2276_s29, 3  ;;  %p2442_p11 = scmp.eq.s32.totalorder %s1733_s0, 0 }
  0x17   : > { %s2744_s21 = scalar_select %p2430_p8, 1, 0 }
  0x18   : > { %s2436_s22 = scalar_select %p414_p7, %s2264_s26, %s416_s19  }
  0x19   : > { %2745 = sst [smem:[#allocation23_spill]] %s2744_s21  ;;  %p2438_p10 = pnand %p1735_p6, %p440_p9 }
  0x1a   : > { %2746 = sst [smem:[#allocation24_spill]] %s2436_s22  ;;  %s2278_s30 = smov [#allocation8]  }
  0x1b   : > { %p1956_p12 = pneg %p2438_p10  ;;  %s480_s20 = sshll.u32 %s2278_s30, 4  ;;  %s481_s20 = int_to_ptr.vmem [resolvable:$true] %s480_s20 }
  0x1c   : > { %s2279_s19 = smov [#allocation5]   ;;  %s2095_s0 = scalar_lea.vmem %s481_s20, 256 }
  0x1d   : > { %p2450_p13 = pnand %p2442_p11, %p1956_p12  ;;  %s464_s28 = sshll.u32 %s2279_s19, 4  ;;  %s465_s28 = int_to_ptr.vmem [resolvable:$true] %s464_s28 }
  0x1e   : > { %p2096_p1 = scmp.ne.s32.totalorder %s481_s20, %s2095_s0  ;;  %p2103_p5 = scmp.lt.s32.totalorder %s481_s20, %s481_s20 }
  0x1f   : > { %p2086_p0 = pneg %p2450_p13  ;;  %p2104_p6 = scmp.lt.s32.totalorder %s2095_s0, %s2095_s0 }
  0x21   : > { %p2098_p2 = pnand %p2096_p1, %p2086_p0  ;;  %p2105_p7 = por %p2104_p6, %p2103_p5 }
  0x23   : > { %p2099_p3 = pneg %p2098_p2 }
  0x25   : > { %p2106_p9 = pnand %p2105_p7, %p2099_p3 }
  0x27   : > { %2109 = shalt.err (!%p2106_p9)
}
  0x28   : > { %s2280_s30 = smov 64   ;;  %s2281_s22 = smov 4  }
  0x29   : > { %s2750_s7 = sld [smem:[#allocation27_spill]]  ;;  %s2121_s21 = scalar_lea.vmem %s465_s28, 256 }
  0x2a   : > { %p2122_p12 = scmp.ne.s32.totalorder %s465_s28, %s2121_s21  ;;  %p2129_p3 = scmp.lt.s32.totalorder %s465_s28, %s465_s28 }
  0x2b   : > { %p2130_p5 = scmp.lt.s32.totalorder %s2121_s21, %s2121_s21 }
  0x2c   : > { %p2124_p1 = pnand %p2122_p12, %p2086_p0 }
  0x2d   : > { %p2131_p6 = por %p2130_p5, %p2129_p3 }
  0x2e   : > { %p2125_p2 = pneg %p2124_p1 }
  0x2f   : > { %1962 = dma.hbm_to_vmem [thread:$0]  (!%p2450_p13), %s2750_s7, 256, %s481_s20, [#allocation9], %s2280_s30, %s2280_s30, %s2281_s22  }
  0x30   : > { %p2132_p7 = pnand %p2131_p6, %p2125_p2 }
  0x32   : > { %2135 = shalt.err (!%p2132_p7)
}
  0x33   : > { %1959 = dma.hbm_to_vmem [thread:$0]  (!%p2450_p13), %s2711_s5, 256, %s465_s28, [#allocation6], %s2280_s30, %s2280_s30, %s2281_s22  }
  0x34   : > { %s2282_s20 = smov [#allocation10]   ;;  %s2283_s7 = smov [#allocation11]  }
  0x35   : > { %s496_s19 = sshll.u32 %s2282_s20, 4  ;;  %s510_s29 = sshll.u32 %s2283_s7, 4  ;;  %s497_s19 = int_to_ptr.vmem [resolvable:$true] %s496_s19  ;;  %s511_s29 = int_to_ptr.vmem [resolvable:$true] %s510_s29 }
  0x36   : > { %s2147_s17 = scalar_lea.vmem %s497_s19, 256  ;;  %p2155_p2 = scmp.lt.s32.totalorder %s497_s19, %s497_s19 }
  0x37   : > { %p2148_p9 = scmp.ne.s32.totalorder %s497_s19, %s2147_s17  ;;  %p2156_p3 = scmp.lt.s32.totalorder %s2147_s17, %s2147_s17 }
  0x39   : > { %p2150_p12 = pnand %p2148_p9, %p2086_p0  ;;  %p2157_p5 = por %p2156_p3, %p2155_p2 }
  0x3b   : > { %p2151_p1 = pneg %p2150_p12 }
  0x3d   : > { %p2158_p6 = pnand %p2157_p5, %p2151_p1 }
  0x3f   : > { %2161 = shalt.err (!%p2158_p6)
}
  0x40   : > { %1965 = dma.hbm_to_vmem [thread:$0]  (!%p2450_p13), %s2715_s9, 256, %s497_s19, [#allocation9], %s2280_s30, %s2280_s30, %s2281_s22  }
  0x41   : > { %s2173_s7 = scalar_lea.vmem %s511_s29, 16  ;;  %s2180_s17 = scalar_lea.vmem %s511_s29, 32 }
  0x42   : > { %p2174_p7 = scmp.ne.s32.totalorder %s511_s29, %s2173_s7  ;;  %p2181_p1 = scmp.lt.s32.totalorder %s511_s29, %s511_s29 }
  0x43   : > { %p2182_p2 = scmp.lt.s32.totalorder %s2180_s17, %s2173_s7 }
  0x44   : > { %p2176_p9 = pnand %p2174_p7, %p2086_p0 }
  0x45   : > { %p2183_p3 = por %p2182_p2, %p2181_p1 }
  0x46   : > { %p2177_p12 = pneg %p2176_p9 }
  0x48   : > { %p2184_p5 = pnand %p2183_p3, %p2177_p12 }
  0x4a   : > { %2187 = shalt.err (!%p2184_p5)
}
  0x4b   : > { %1968 = dma.hbm_to_vmem [thread:$0]  (!%p2450_p13), %s2716_s10, 16, %s511_s29, [#allocation12]  }
  0x4c   : > { %548 = sbr.rel (%p2438_p10) target bundleno = 2211 (0x8a3), region = 88 }
  0x51   : > { %2239 = dma.done.wait (%p2442_p11), [#allocation6], 256  }
  0x52   : > { %2241 = vsyncadd (%p2442_p11), [#allocation6], 4294967040 }
  0x53   : > { %2243 = dma.done.wait (%p2442_p11), [#allocation9], 512  }
  0x54   : > { %2245 = vsyncadd (%p2442_p11), [#allocation9], 4294966784 }
  0x55   : > { %2247 = dma.done.wait (%p2442_p11), [#allocation12], 16  }
  0x56   : > { %2249 = vsyncadd (%p2442_p11), [#allocation12], 4294967280  ;;  %p611_p10 = scmp.lt.s32.totalorder %s2268_s27, 1  ;;  %v2284_v0 = vmov 0.0   ;;  %vm2285_vm0 = vmmov 0   ;;  %s2751_s23 = sld [smem:[#allocation25_spill]] }
  0x57   : > { %1838 = vmatprep.subr.bf16.mxu0 %v2284_v0  ;;  %1842 = vmatprep.mubr.msk.bf16.mxu0 %vm2285_vm0, %v2284_v0  ;;  %v2044_v1 = vld [vmem:[%s2709_s3 + $0x8] sm:$0xff]   ;;  %v2045_v2 = vld [vmem:[%s2709_s3] sm:$0xff]   ;;  %vm645_vm1 = vcmask 261120   ;;  %s2752_s0 = sld [smem:[#allocation26_spill]]  ;;  %v2048_v7 = vld [vmem:[#allocation5 + $0x8] sm:$0xff]   ;;  %vm690_vm2 = vcmask 257024  }
  0x58   : > { %s612_s29 = scalar_select %p611_p10, %s2268_s27, 1  ;;  %1846 = vmatprep.subr.bf16.mxu1 %v2284_v0  ;;  %1850 = vmatprep.mubr.msk.bf16.mxu1 %vm2285_vm0, %v2284_v0  ;;  %v2049_v8 = vld [vmem:[#allocation5] sm:$0xff]   ;;  %v1748_v9 = vld [vmem:[%s2710_s4] ss:$0 sm:$0xff]  ;;  %vm830_vm3 = vcmask 64512   ;;  %vm893_vm4 = vcmask 1043456  }
  0x59   : > { %1839 = vmatpush3.bf16.msra.mxu0 %v2044_v1  ;;  %1847 = vmatpush3.bf16.msra.mxu1 %v2048_v7  ;;  %v1756_v16 = vld [vmem:[%s2708_s2] ss:$0 sm:$0xff]  ;;  %s2287_s20 = smov 120   ;;  %s2288_s19 = smov 104   ;;  %vm938_vm5 = vcmask 60416   ;;  %vm1066_vm6 = vcmask 126016  }
  0x5a   : > { %s1747_s18 = sshll.u32 %s612_s29, 3  ;;  %1840 = vmatprep.subr.bf16.mxu0 %v2284_v0  ;;  %1848 = vmatprep.subr.bf16.mxu1 %v2284_v0  ;;  %v1752_v28 = vld [vmem:[%s2712_s6] ss:$0 sm:$0xff]  ;;  %s2289_s7 = smov 8   ;;  %vm1193_vm7 = vcmask 191616   ;;  %vm1320_vm8 = vcmask 257216  }
  0x5b   : > { %s2290_s17 = smov 16   ;;  %s2291_s26 = smov 24   ;;  %vm1530_vm9 = vcmask 523264  }
  0x5c   : > { %s614_s30 = scalar_lea.vmem %s2751_s23, %s1747_s18  ;;  %s608_s24 = sand.u32 1, %s2260_s25  }
  0x5d   : > { %v2528_v3 = vld [vmem:[%s614_s30] sm:$0xff]  ;;  %v2046_v4 = vld [vmem:[%s2752_s0 + $0x8] sm:$0xff]   ;;  %1841 = vmatpush3.bf16.msra.mxu0 %v2045_v2  ;;  %1849 = vmatpush3.bf16.msra.mxu1 %v2049_v8  ;;  %s2286_s30 = smov 112   ;;  %s1746_s23 = sshll.u32 %s608_s24, 3 }
  0x5e   : > { %v621_v5 = vpack.c.bf16 %v2528_v3, %v2528_v3  ;;  %1854 = vmatprep.subr.bf16.mxu0 %v2284_v0  ;;  %v2047_v6 = vld [vmem:[%s2752_s0] sm:$0xff]   ;;  %1862 = vmatprep.subr.bf16.mxu1 %v2284_v0  ;;  %s1796_s21 = sshll.u32 %s2268_s27, 7  ;;  %s2753_s18 = sld [smem:[#allocation28_spill]] }
  0x5f   : > { %s1608_s0 = scalar_lea.sflag [#allocation7], %s608_s24 }
  0x60   : > { %1843 = vmatmul.mubr.msk.bf16.vlgmr.msra.gmra.mxu0 %vm645_vm1, %v621_v5  ;;  %1851 = vmatmul.mubr.msk.bf16.vlgmr.msra.gmra.mxu1 %vm645_vm1, %v621_v5 }
  0x61   : > { %1855 = vmatpush3.bf16.msra.mxu0 %v2046_v4  ;;  %1858 = vmatprep.mubr.msk.bf16.mxu0 %vm2285_vm0, %v2284_v0 }
  0x62   : > { %1856 = vmatprep.subr.bf16.mxu0 %v2284_v0  ;;  %1864 = vmatprep.mubr.msk.bf16.mxu1 %vm2285_vm0, %v2284_v0 }
  0x64   : > { %s1620_s22 = scalar_lea.hbm %s2753_s18, %s1796_s21 }
  0x65   : > { %1857 = vmatpush3.bf16.msra.mxu0 %v2047_v6 }
  0x66   : > { %1868 = vmatprep.subr.bf16.mxu0 %v2284_v0 }
  0x68   : > { %1859 = vmatmul.mubr.msk.bf16.vlgmr.msra.gmra.mxu0 %vm645_vm1, %v621_v5 }
  0x69   : > { %1870 = vmatprep.mubr.msk.bf16.mxu0 %vm2285_vm0, %v2284_v0 }
 0x120   : > { %v683_v10 = vpop.f32.mrf.mxu0  ;;  %v749_v29 = vpop.f32.mrf.mxu1 }
 0x121   : > { %v684_v11 = vadd.f32 %v1748_v9, %v683_v10  ;;  %v750_v30 = vadd.f32 %v1752_v28, %v749_v29 }
 0x122   : > { %v1844_v12 = vpop.f32.mrf.mxu0  ;;  %v1852_v31 = vpop.f32.mrf.mxu1 }
 0x123   : > { %v689_v13 = vpack.c.bf16 %v684_v11, %v684_v11  ;;  %v755_v32 = vpack.c.bf16 %v750_v30, %v750_v30 }
 0x124   : > { %v686_v14 = vpop.f32.mrf.mxu0  ;;  %v752_v33 = vpop.f32.mrf.mxu1 }
 0x125   : > { %691 = vst.msk [vmem:[#allocation2] sm:$0xf] %vm690_vm2, %v689_v13  ;;  %756 = vst.msk [vmem:[#allocation3] sm:$0xf] %vm690_vm2, %v755_v32 }
 0x126   : > { %v1845_v15 = vpop.f32.mrf.mxu0  ;;  %v1853_v34 = vpop.f32.mrf.mxu1 }
 0x128   : > { %v822_v17 = vpop.f32.mrf.mxu0 }
 0x129   : > { %v823_v18 = vadd.f32 %v1756_v16, %v822_v17 }
 0x12a   : > { %v1860_v19 = vpop.f32.mrf.mxu0 }
 0x12b   : > { %v828_v25 = vpack.c.bf16 %v823_v18, %v823_v18 }
 0x12c   : > { %v829_v20 = vld [vmem:[#allocation2] sm:$0xf]  ;;  %v825_v22 = vpop.f32.mrf.mxu0  ;;  %v889_v35 = vld [vmem:[#allocation3] sm:$0xf] }
 0x12d   : > { %v2050_v21 = vld [vmem:[#allocation2] ss:$0 sps:$4 sm:$0xff]   ;;  %v835_v23 = vsel %vm830_vm3, %v829_v20, 0  ;;  %v895_v36 = vsel %vm893_vm4, %v889_v35, 0  ;;  %v2053_v9 = vld [vmem:[#allocation3] ss:$0 sps:$4 sm:$0xff]  }
 0x12e   : > { %v2051_v24 = vld [vmem:[#allocation2] ss:$0 sps:$4 sm:$0xff]   ;;  %1863 = vmatpush3.bf16.xpose.msra.mxu1 %v835_v23  ;;  %1074 = vrot.lane.b32.xlu1 %v2050_v21, %s2286_s30  ;;  %v1861_v26 = vpop.f32.mrf.mxu0  ;;  %v2055_v30 = vld [vmem:[#allocation3] ss:$0 sps:$4 sm:$0xff]  }
 0x12f   : > { %947 = vrot.lane.b32.xlu0 %v2051_v24, %s2287_s20  ;;  %1874 = vmatprep.subr.bf16.mxu1 %v2284_v0  ;;  %v2052_v27 = vld [vmem:[#allocation2] ss:$0 sps:$4 sm:$0xff]   ;;  %v2054_v26 = vld [vmem:[#allocation3] ss:$0 sps:$4 sm:$0xff]  }
 0x130   : > { %1869 = vmatpush3.bf16.msra.mxu0 %v895_v36 }
 0x131   : > { %1880 = vmatprep.subr.bf16.mxu0 %v2284_v0 }
 0x132   : > { %1069 = vrot.lane.b32.xlu1 %v828_v25, %s2286_s30 }
 0x133   : > { %942 = vrot.lane.b32.xlu0 %v828_v25, %s2287_s20 }
 0x135   : > { %1865 = vmatmul.mubr.msk.bf16.vlgmr.msra.gmra.mxu1 %vm830_vm3, %v828_v25 }
 0x136   : > { %1196 = vrot.lane.b32.xlu1 %v828_v25, %s2288_s19  ;;  %1876 = vmatprep.mubr.msk.bf16.mxu1 %vm2285_vm0, %v2284_v0 }
 0x137   : > { %1201 = vrot.lane.b32.xlu0 %v2052_v27, %s2288_s19 }
 0x1a0   : > { %v1075_v39 = vpop.permute.xlu1 %1074 }
 0x1a1   : > { %v948_v37 = vpop.permute.xlu0 %947  ;;  %v1080_v41 = vsel %vm830_vm3, %v1075_v39, 0 }
 0x1a2   : > { %v953_v38 = vsel %vm830_vm3, %v948_v37, 0 }
 0x1a3   : > { %1875 = vmatpush3.bf16.xpose.msra.mxu1 %v953_v38 }
 0x1a4   : > { %1886 = vmatprep.subr.bf16.mxu1 %v2284_v0  ;;  %v1070_v43 = vpop.permute.xlu1 %1069 }
 0x1a5   : > { %v943_v40 = vpop.permute.xlu0 %942 }
 0x1a8   : > { %v1197_v45 = vpop.permute.xlu1 %1196 }
 0x1a9   : > { %v1202_v42 = vpop.permute.xlu0 %1201 }
 0x1aa   : > { %1877 = vmatmul.mubr.msk.bf16.vlgmr.msra.gmra.mxu1 %vm830_vm3, %v943_v40  ;;  %v1207_v44 = vsel %vm830_vm3, %v1202_v42, 0 }
 0x1ab   : > { %1887 = vmatpush3.bf16.xpose.msra.mxu1 %v1080_v41  ;;  %1888 = vmatprep.mubr.msk.bf16.mxu1 %vm2285_vm0, %v2284_v0 }
 0x1ac   : > { %1898 = vmatprep.subr.bf16.mxu1 %v2284_v0 }
 0x1b2   : > { %1889 = vmatmul.mubr.msk.bf16.vlgmr.msra.gmra.mxu1 %vm830_vm3, %v1070_v43 }
 0x1b3   : > { %1899 = vmatpush3.bf16.xpose.msra.mxu1 %v1207_v44  ;;  %1900 = vmatprep.mubr.msk.bf16.mxu1 %vm2285_vm0, %v2284_v0 }
 0x1b4   : > { %1910 = vmatprep.subr.bf16.mxu1 %v2284_v0 }
 0x1ba   : > { %1901 = vmatmul.mubr.msk.bf16.vlgmr.msra.gmra.mxu1 %vm830_vm3, %v1197_v45 }
 0x1bb   : > { %1914 = vmatprep.mubr.msk.bf16.mxu1 %vm2285_vm0, %v2284_v0 }
 0x1f5   : > { %v871_v46 = vpop.f32.mrf.mxu1 }
 0x1f6   : > { %v877_v47 = vsel %vm830_vm3, %v871_v46, -inf }
 0x1f7   : > { %878 = vmax.xlane.f32.xlu0 %v877_v47  ;;  %v1866_v48 = vpop.f32.mrf.mxu1 }
 0x1f9   : > { %v874_v49 = vpop.f32.mrf.mxu1 }
 0x1fb   : > { %v1867_v50 = vpop.f32.mrf.mxu1 }
 0x26a   : > { %v989_v51 = vpop.f32.mrf.mxu1 }
 0x26b   : > { %v995_v52 = vsel %vm830_vm3, %v989_v51, -inf }
 0x26c   : > { %996 = vmax.xlane.f32.xlu1 %v995_v52  ;;  %v1878_v53 = vpop.f32.mrf.mxu1 }
 0x26e   : > { %v992_v54 = vpop.f32.mrf.mxu1 }
 0x270   : > { %v1879_v55 = vpop.f32.mrf.mxu1 }
 0x272   : > { %v1116_v56 = vpop.f32.mrf.mxu1 }
 0x273   : > { %v1122_v57 = vsel %vm830_vm3, %v1116_v56, -inf }
 0x274   : > { %1123 = vmax.xlane.f32.xlu0 %v1122_v57  ;;  %v1890_v58 = vpop.f32.mrf.mxu1 }
 0x276   : > { %v1119_v59 = vpop.f32.mrf.mxu1 }
 0x277   : > { %v2056_v59 = vld [vmem:[#allocation8 + $0x8] sm:$0xff]  }
 0x278   : > { %v1891_v60 = vpop.f32.mrf.mxu1  ;;  %1911 = vmatpush3.bf16.msra.mxu1 %v2056_v59 }
 0x279   : > { %1912 = vmatprep.subr.bf16.mxu1 %v2284_v0 }
 0x27a   : > { %v1243_v61 = vpop.f32.mrf.mxu1 }
 0x27b   : > { %v1249_v62 = vsel %vm830_vm3, %v1243_v61, -inf }
 0x27c   : > { %1250 = vmax.xlane.f32.xlu0 %v1249_v62  ;;  %v1902_v63 = vpop.f32.mrf.mxu1 }
 0x27e   : > { %v1246_v1 = vpop.f32.mrf.mxu1 }
 0x280   : > { %v879_v2 = vpop.xlane.xlu0 %878  ;;  %v1903_v4 = vpop.f32.mrf.mxu1 }
 0x281   : > { %v880_v5 = vsub.f32 %v871_v46, %v879_v2 }
 0x283   : > { %v881_v6 = vmul.f32 1.442695, %v880_v5 }
 0x285   : > { %2064 = vpow2.f32 %v881_v6 }
 0x292   : > { %v2065_v7 = vpop.eup %2064 }
 0x293   : > { %v883_v8 = vsel %vm830_vm3, %v2065_v7, 0.0 }
 0x294   : > { %884 = vadd.xlane.f32.xlu1 %v883_v8 }
 0x2a5   : > { %1011 = vrot.lane.b32.xlu1 %v2053_v9, %s2287_s20  ;;  %s2292_s20 = smov [#allocation13]  }
 0x2f5   : > { %v997_v10 = vpop.xlane.xlu1 %996 }
 0x2f6   : > { %v998_v11 = vsub.f32 %v989_v51, %v997_v10 }
 0x2f8   : > { %v999_v12 = vmul.f32 1.442695, %v998_v11 }
 0x2fa   : > { %2066 = vpow2.f32 %v999_v12 }
 0x2fd   : > { %v1124_v13 = vpop.xlane.xlu0 %1123 }
 0x2fe   : > { %v1125_v14 = vsub.f32 %v1116_v56, %v1124_v13  ;;  %v1777_v13 = vld [vmem:[%s2714_s8] ss:$0 sm:$0xff] }
 0x300   : > { %v1126_v15 = vmul.f32 1.442695, %v1125_v14 }
 0x302   : > { %2068 = vpow2.f32 %v1126_v15 }
 0x305   : > { %v1251_v16 = vpop.xlane.xlu0 %1250 }
 0x306   : > { %v1252_v17 = vsub.f32 %v1243_v61, %v1251_v16  ;;  %v2057_v61 = vld [vmem:[#allocation8] sm:$0xff]  }
 0x307   : > { %v2067_v18 = vpop.eup %2066  ;;  %1913 = vmatpush3.bf16.msra.mxu1 %v2057_v61 }
 0x308   : > { %v1253_v19 = vmul.f32 1.442695, %v1252_v17  ;;  %v1001_v20 = vsel %vm830_vm3, %v2067_v18, 0.0  ;;  %1926 = vmatprep.subr.bf16.mxu1 %v2284_v0 }
 0x309   : > { %1002 = vadd.xlane.f32.xlu0 %v1001_v20 }
 0x30a   : > { %2070 = vpow2.f32 %v1253_v19 }
 0x30f   : > { %v2069_v21 = vpop.eup %2068 }
 0x310   : > { %v1128_v22 = vsel %vm830_vm3, %v2069_v21, 0.0 }
 0x311   : > { %1129 = vadd.xlane.f32.xlu1 %v1128_v22 }
 0x317   : > { %v2071_v23 = vpop.eup %2070 }
 0x318   : > { %v1255_v24 = vsel %vm830_vm3, %v2071_v23, 0.0 }
 0x319   : > { %1256 = vadd.xlane.f32.xlu0 %v1255_v24  ;;  %v2059_v24 = vld [vmem:[#allocation10] sm:$0xff]  }
 0x31d   : > { %v885_v25 = vpop.xlane.xlu1 %884 }
 0x31e   : > { %2072 = vrcp.f32 %v885_v25  ;;  %v2060_v25 = vld [vmem:[%s2717_s11 + $0x18] sm:$0xff]  }
 0x321   : > { %v1012_v29 = vpop.permute.xlu1 %1011 }
 0x322   : > { %1265 = vrot.lane.b32.xlu1 %v2054_v26, %s2288_s19  ;;  %v1017_v32 = vsel %vm893_vm4, %v1012_v29, 0  ;;  %s2192_s19 = sshll.u32 %s2292_s20, 4  ;;  %s2193_s19 = int_to_ptr.vmem [resolvable:$false] %s2192_s19 }
 0x323   : > { %s2194_s27 = scalar_lea.vmem %s2193_s19, 256 }
 0x32b   : > { %v2073_v27 = vpop.eup %2072 }
 0x32c   : > { %v887_v28 = vmul.f32 %v2073_v27, %v2065_v7 }
 0x32e   : > { %v888_v31 = vpack.c.bf16 %v887_v28, %v887_v28 }
 0x32f   : > { %1138 = vrot.lane.b32.xlu0 %v2055_v30, %s2286_s30 }
 0x330   : > { %1871 = vmatmul.mubr.msk.bf16.vlgmr.msra.gmra.mxu0 %vm830_vm3, %v888_v31 }
 0x331   : > { %1881 = vmatpush3.bf16.msra.mxu0 %v1017_v32  ;;  %1882 = vmatprep.mubr.msk.bf16.mxu0 %vm2285_vm0, %v2284_v0 }
 0x332   : > { %1892 = vmatprep.subr.bf16.mxu0 %v2284_v0 }
 0x392   : > { %v1003_v33 = vpop.xlane.xlu0 %1002 }
 0x393   : > { %2074 = vrcp.f32 %v1003_v33 }
 0x39a   : > { %v1130_v34 = vpop.xlane.xlu1 %1129 }
 0x39b   : > { %2076 = vrcp.f32 %v1130_v34 }
 0x39e   : > { %v1266_v43 = vpop.permute.xlu1 %1265 }
 0x39f   : > { %v1271_v45 = vsel %vm893_vm4, %v1266_v43, 0  ;;  %v1783_v43 = vld [vmem:[#allocation11] ss:$0 sm:$0xff] }
 0x3a0   : > { %v2075_v35 = vpop.eup %2074 }
 0x3a1   : > { %v1005_v36 = vmul.f32 %v2075_v35, %v2067_v18  ;;  %v1781_v35 = vld [vmem:[%s2719_s13] ss:$0 sm:$0xff] }
 0x3a2   : > { %v1257_v37 = vpop.xlane.xlu0 %1256 }
 0x3a3   : > { %2078 = vrcp.f32 %v1257_v37  ;;  %v1006_v38 = vpack.c.bf16 %v1005_v36, %v1005_v36  ;;  %v1782_v37 = vld [vmem:[%s2720_s14] ss:$0 sm:$0xff] }
 0x3a5   : > { %1883 = vmatmul.mubr.msk.bf16.vlgmr.msra.gmra.mxu0 %vm830_vm3, %v1006_v38 }
 0x3a6   : > { %v1139_v39 = vpop.permute.xlu0 %1138  ;;  %1894 = vmatprep.mubr.msk.bf16.mxu0 %vm2285_vm0, %v2284_v0 }
 0x3a7   : > { %v1144_v40 = vsel %vm893_vm4, %v1139_v39, 0 }
 0x3a8   : > { %v2077_v41 = vpop.eup %2076  ;;  %1893 = vmatpush3.bf16.msra.mxu0 %v1144_v40 }
 0x3a9   : > { %1904 = vmatprep.subr.bf16.mxu0 %v2284_v0  ;;  %v1132_v42 = vmul.f32 %v2077_v41, %v2069_v21  ;;  %v2062_v41 = vld [vmem:[%s2717_s11 + $0x8] sm:$0xff]  }
 0x3ab   : > { %v1133_v44 = vpack.c.bf16 %v1132_v42, %v1132_v42  ;;  %v2063_v42 = vld [vmem:[%s2717_s11] sm:$0xff]  }
 0x3ad   : > { %1895 = vmatmul.mubr.msk.bf16.vlgmr.msra.gmra.mxu0 %vm830_vm3, %v1133_v44 }
 0x3ae   : > { %1905 = vmatpush3.bf16.msra.mxu0 %v1271_v45  ;;  %1906 = vmatprep.mubr.msk.bf16.mxu0 %vm2285_vm0, %v2284_v0 }
 0x3af   : > { %1918 = vmatprep.subr.bf16.mxu0 %v2284_v0 }
 0x3b0   : > { %v2079_v46 = vpop.eup %2078 }
 0x3b1   : > { %v1259_v47 = vmul.f32 %v2079_v46, %v2071_v23  ;;  %v2058_v23 = vld [vmem:[#allocation10 + $0x8] sm:$0xff]  }
 0x3b3   : > { %v1260_v48 = vpack.c.bf16 %v1259_v47, %v1259_v47 }
 0x3b5   : > { %1907 = vmatmul.mubr.msk.bf16.vlgmr.msra.gmra.mxu0 %vm830_vm3, %v1260_v48 }
 0x3b6   : > { %1922 = vmatprep.mubr.msk.bf16.mxu0 %vm2285_vm0, %v2284_v0  ;;  %1919 = vmatpush3.bf16.msra.mxu0 %v2058_v23 }
 0x3b7   : > { %1920 = vmatprep.subr.bf16.mxu0 %v2284_v0 }
 0x3ba   : > { %1921 = vmatpush3.bf16.msra.mxu0 %v2059_v24 }
 0x3f0   : > { %v931_v49 = vpop.f32.mrf.mxu0 }
 0x3f1   : > { %v937_v50 = vpack.c.bf16 %v931_v49, %v931_v49 }
 0x3f2   : > { %v1872_v51 = vpop.f32.mrf.mxu0 }
 0x3f3   : > { %939 = vst.msk [vmem:[#allocation4] sm:$0xf] %vm938_vm5, %v937_v50  ;;  %v1787_v51 = vld [vmem:[%s2718_s12] ss:$0 sm:$0xff] }
 0x3f4   : > { %v934_v52 = vpop.f32.mrf.mxu0 }
 0x3f6   : > { %v1873_v53 = vpop.f32.mrf.mxu0 }
 0x465   : > { %v1053_v54 = vpop.f32.mrf.mxu0 }
 0x466   : > { %v1799_v55 = vpack.c.bf16 %v1053_v54, %v1053_v54 }
 0x467   : > { %v1884_v56 = vpop.f32.mrf.mxu0 }
 0x468   : > { %1063 = vrot.lane.b32.xlu1 %v1799_v55, %s2289_s7  ;;  %s610_s7 = scalar_lea.vmem [#allocation13], %s1746_s23 }
 0x469   : > { %v1056_v57 = vpop.f32.mrf.mxu0 }
 0x46b   : > { %v1885_v58 = vpop.f32.mrf.mxu0 }
 0x46d   : > { %v1180_v60 = vpop.f32.mrf.mxu0 }
 0x46e   : > { %v1800_v62 = vpack.c.bf16 %v1180_v60, %v1180_v60 }
 0x46f   : > { %v1896_v63 = vpop.f32.mrf.mxu0 }
 0x470   : > { %1190 = vrot.lane.b32.xlu0 %v1800_v62, %s2290_s17  ;;  %s1622_s17 = sshll.u32 %s610_s7, 4  ;;  %s1623_s17 = int_to_ptr.vmem [resolvable:$true] %s1622_s17 }
 0x471   : > { %v1183_v1 = vpop.f32.mrf.mxu0  ;;  %s2188_s30 = scalar_lea.vmem %s1623_s17, 128  ;;  %p2195_p6 = scmp.lt.s32.totalorder %s1623_s17, %s2193_s19 }
 0x472   : > { %p2189_p11 = scmp.ne.s32.totalorder %s1623_s17, %s2188_s30  ;;  %p2196_p7 = scmp.lt.s32.totalorder %s2194_s27, %s2188_s30 }
 0x473   : > { %v1897_v2 = vpop.f32.mrf.mxu0 }
 0x474   : > { %p2190_p13 = pnand %p2189_p11, %p2423_p4  ;;  %p2197_p9 = por %p2196_p7, %p2195_p6 }
 0x475   : > { %v1307_v4 = vpop.f32.mrf.mxu0 }
 0x476   : > { %v1801_v5 = vpack.c.bf16 %v1307_v4, %v1307_v4  ;;  %p2191_p0 = pneg %p2190_p13 }
 0x477   : > { %v1908_v6 = vpop.f32.mrf.mxu0 }
 0x478   : > { %1317 = vrot.lane.b32.xlu1 %v1801_v5, %s2291_s26  ;;  %p2198_p12 = pnand %p2197_p9, %p2191_p0 }
 0x479   : > { %v1310_v7 = vpop.f32.mrf.mxu0 }
 0x47a   : > { %v1793_v7 = vld [vmem:[%s2721_s15] ss:$0 sm:$0xff] }
 0x47b   : > { %v1909_v8 = vpop.f32.mrf.mxu0 }
 0x4da   : > { %v1064_v9 = vpop.permute.xlu1 %1063 }
 0x4db   : > { %1067 = vst.msk [vmem:[#allocation4] sm:$0xf] %vm1066_vm6, %v1064_v9  ;;  %v1794_v9 = vld [vmem:[%s2722_s16] ss:$0 sm:$0xff] }
 0x4e2   : > { %v1191_v10 = vpop.permute.xlu0 %1190 }
 0x4e3   : > { %1194 = vst.msk [vmem:[#allocation4] sm:$0xf] %vm1193_vm7, %v1191_v10 }
 0x4ea   : > { %v1318_v11 = vpop.permute.xlu1 %1317 }
 0x4eb   : > { %1321 = vst.msk [vmem:[#allocation4] sm:$0xf] %vm1320_vm8, %v1318_v11 }
 0x4f2   : > { %v1322_v12 = vld [vmem:[#allocation4] sm:$0xf] }
 0x4f3   : > { %1915 = vmatmul.mubr.msk.bf16.vlgmr.msra.gmra.mxu1 %vm645_vm1, %v1322_v12 }
 0x4f4   : > { %1934 = vmatprep.mubr.msk.bf16.mxu1 %vm2285_vm0, %v2284_v0  ;;  %1927 = vmatpush3.bf16.msra.mxu1 %v2060_v25 }
 0x4f5   : > { %1928 = vmatprep.subr.bf16.mxu1 %v2284_v0 }
 0x5b3   : > { %v1383_v14 = vpop.f32.mrf.mxu1 }
 0x5b4   : > { %v1384_v15 = vadd.f32 %v1777_v13, %v1383_v14 }
 0x5b5   : > { %v1916_v16 = vpop.f32.mrf.mxu1 }
 0x5b6   : > { %v1389_v17 = vadd.f32 %v1384_v15, %v2528_v3  ;;  %v2061_v3 = vld [vmem:[%s2717_s11 + $0x10] sm:$0xff]  }
 0x5b7   : > { %v1386_v18 = vpop.f32.mrf.mxu1  ;;  %1929 = vmatpush3.bf16.msra.mxu1 %v2061_v3 }
 0x5b8   : > { %v1392_v19 = vsel %vm645_vm1, %v1389_v17, 0.0  ;;  %v1397_v20 = vmul.f32 %v1389_v17, %v1389_v17  ;;  %1930 = vmatprep.subr.bf16.mxu1 %v2284_v0 }
 0x5b9   : > { %1393 = vadd.xlane.f32.xlu0 %v1392_v19  ;;  %v1917_v21 = vpop.f32.mrf.mxu1 }
 0x5ba   : > { %v1398_v22 = vsel %vm645_vm1, %v1397_v20, 0.0 }
 0x5bb   : > { %1399 = vadd.xlane.f32.xlu1 %v1398_v22  ;;  %1931 = vmatpush3.bf16.msra.mxu1 %v2062_v41 }
 0x5bc   : > { %1932 = vmatprep.subr.bf16.mxu1 %v2284_v0 }
 0x5bf   : > { %1933 = vmatpush3.bf16.msra.mxu1 %v2063_v42 }
 0x642   : > { %v1394_v26 = vpop.xlane.xlu0 %1393 }
 0x643   : > { %v1396_v27 = vmul.f32 0.03125, %v1394_v26 }
 0x644   : > { %v1400_v28 = vpop.xlane.xlu1 %1399 }
 0x645   : > { %v1402_v29 = vmul.f32 %v1396_v27, %v1396_v27  ;;  %v1401_v30 = vmul.f32 0.03125, %v1400_v28  ;;  %v1404_v33 = vsub.f32 %v1389_v17, %v1396_v27 }
 0x647   : > { %v1403_v31 = vsub.f32 %v1401_v30, %v1402_v29 }
 0x649   : > { %v1405_v32 = vadd.f32 1e-05, %v1403_v31 }
 0x64b   : > { %2080 = vrsqrt.f32 %v1405_v32 }
 0x658   : > { %v2081_v34 = vpop.eup %2080 }
 0x659   : > { %v1407_v36 = vmul.f32 %v2081_v34, %v1404_v33 }
 0x65b   : > { %v1414_v38 = vmul.f32 %v1781_v35, %v1407_v36 }
 0x65d   : > { %v1421_v39 = vadd.f32 %v1782_v37, %v1414_v38 }
 0x65f   : > { %v1422_v40 = vpack.c.bf16 %v1421_v39, %v1421_v39 }
 0x661   : > { %1923 = vmatmul.mubr.msk.bf16.vlgmr.msra.gmra.mxu0 %vm645_vm1, %v1422_v40 }
 0x721   : > { %v1483_v44 = vpop.f32.mrf.mxu0 }
 0x722   : > { %v1484_v45 = vadd.f32 %v1783_v43, %v1483_v44 }
 0x723   : > { %v1924_v46 = vpop.f32.mrf.mxu0 }
 0x724   : > { %v1489_v47 = vmax.f32 %v1484_v45, 0.0 }
 0x725   : > { %v1486_v48 = vpop.f32.mrf.mxu0 }
 0x726   : > { %v1490_v49 = vpack.c.bf16 %v1489_v47, %v1489_v47 }
 0x727   : > { %v1925_v50 = vpop.f32.mrf.mxu0 }
 0x728   : > { %1935 = vmatmul.mubr.msk.bf16.vlgmr.msra.gmra.mxu1 %vm1530_vm9, %v1490_v49 }
 0x7e8   : > { %v1568_v0 = vpop.f32.mrf.mxu1 }
 0x7e9   : > { %v1569_v52 = vadd.f32 %v1787_v51, %v1568_v0 }
 0x7ea   : > { %v1936_v53 = vpop.f32.mrf.mxu1 }
 0x7eb   : > { %v1574_v54 = vadd.f32 %v1569_v52, %v1421_v39 }
 0x7ec   : > { %v1571_v55 = vpop.f32.mrf.mxu1 }
 0x7ed   : > { %v1577_v56 = vsel %vm645_vm1, %v1574_v54, 0.0  ;;  %v1581_v57 = vmul.f32 %v1574_v54, %v1574_v54 }
 0x7ee   : > { %1578 = vadd.xlane.f32.xlu0 %v1577_v56  ;;  %v1937_v58 = vpop.f32.mrf.mxu1 }
 0x7ef   : > { %v1582_v59 = vsel %vm645_vm1, %v1581_v57, 0.0 }
 0x7f2   : > { %1583 = vadd.xlane.f32.xlu0 %v1582_v59 }
 0x877   : > { %v1579_v60 = vpop.xlane.xlu0 %1578 }
 0x878   : > { %v1580_v61 = vmul.f32 0.03125, %v1579_v60 }
 0x87a   : > { %v1586_v63 = vmul.f32 %v1580_v61, %v1580_v61  ;;  %v1588_v5 = vsub.f32 %v1574_v54, %v1580_v61 }
 0x87b   : > { %v1584_v62 = vpop.xlane.xlu0 %1583 }
 0x87c   : > { %v1585_v1 = vmul.f32 0.03125, %v1584_v62 }
 0x87e   : > { %v1587_v2 = vsub.f32 %v1585_v1, %v1586_v63 }
 0x880   : > { %v1589_v4 = vadd.f32 1e-05, %v1587_v2 }
 0x882   : > { %2082 = vrsqrt.f32 %v1589_v4 }
 0x88f   : > { %v2083_v6 = vpop.eup %2082 }
 0x890   : > { %v1591_v8 = vmul.f32 %v2083_v6, %v1588_v5 }
 0x892   : > { %v1598_v10 = vmul.f32 %v1793_v7, %v1591_v8 }
 0x894   : > { %v1605_v11 = vadd.f32 %v1794_v9, %v1598_v10 }
 0x896   : > { %1606 = vst.msk [vmem:[%s610_s7] sm:$0xff] %vm645_vm1, %v1605_v11 }
 0x897   : > { %2201 = shalt.err (!%p2198_p12)
}
 0x898   : > { %s2202_s23 = scalar_lea.hbm %s1620_s22, 128  ;;  %s2206_s21 = scalar_lea.hbm %s2753_s18, 256 }
 0x899   : > { %p2203_p1 = scmp.ne.s32.totalorder %s1620_s22, %s2202_s23  ;;  %p2207_p5 = scmp.lt.s32.totalorder %s1620_s22, %s2753_s18 }
 0x89a   : > { %p2208_p10 = scmp.lt.s32.totalorder %s2206_s21, %s2202_s23 }
 0x89b   : > { %p2204_p2 = pnand %p2203_p1, %p2423_p4 }
 0x89c   : > { %p2209_p11 = por %p2208_p10, %p2207_p5 }
 0x89d   : > { %p2205_p3 = pneg %p2204_p2 }
 0x89f   : > { %p2210_p13 = pnand %p2209_p11, %p2205_p3 }
 0x8a1   : > { %2213 = shalt.err (!%p2210_p13)
}
 0x8a2   : > { %1954 = dma.vmem_to_hbm [thread:$0]  (%p2423_p4), %s1623_s17, 128, %s1620_s22, %s1608_s0  }
 0x8a3 PF: > { %s2754_s29 = sld [smem:[#allocation21_spill]] }
 0x8a4   : > { %s2755_s30 = sld [smem:[#allocation18_spill]] }
 0x8a9   : > { %p1981_p0 = scmp.ge.s32.totalorder %s2754_s29, 2 }
 0x8aa   : > { %s1634_s19 = sand.u32 1, %s2755_s30  }
 0x8ab   : > { %p1970_p6 = pnand %p1981_p0, %p2430_p8  ;;  %s1635_s27 = scalar_lea.sflag [#allocation7], %s1634_s19 }
 0x8ad   : > { %p1971_p7 = pneg %p1970_p6 }
 0x8af   : > { %2251 = dma.done.wait (%p1971_p7), %s1635_s27, 128  }
 0x8b0   : > { %2253 = vsyncadd (%p1971_p7), %s1635_s27, 4294967168  ;;  %s33_s29 = sadd.s32 1, %s2754_s29   ;;  %s2757_s23 = sld [smem:[#allocation19_spill]] }
 0x8b1   : > { %p30_p9 = scmp.ge.s32.totalorder %s33_s29, 4   ;;  %s2758_s26 = sld [smem:[#allocation24_spill]] }
 0x8b2   : > { %s2759_s27 = sld [smem:[#allocation20_spill]]  ;;  %s2761_s24 = smov %s2260_s25 }
 0x8b3   : > { %s2760_s28 = sld [smem:[#allocation22_spill]]  ;;  %32 = sbr.rel (!%p30_p9) target bundleno = 12 (0xc), region = 145 }
 0x8b6   : > { %s2762_s25 = smov %s2757_s23 }
 0x8b8   :  { %1640 = vsyncpa [#allocation6], 1 }
 0x8b9   :  { %1642 = vsyncpa [#allocation6 + $0x1], 1 }
 0x8ba   :  { %1643 = vsyncpa [#allocation9], 1 }
 0x8bb   :  { %1644 = vsyncpa [#allocation12], 1 }
 0x8bc   :  { %1645 = vsyncpa [#allocation7], 1 }
 0x8bd   :  { %1647 = vsyncpa [#allocation7 + $0x1], 1 }

</bundles_post_ra>
